<compile_context>
chip_gen: v6e
topology: v6e:2x2x1
jax: 0.10.0
libtpu: 0.0.40
codegen_flags: <defaults>
</compile_context>

<pallas_src>
import functools

import jax
import jax.numpy as jnp
import numpy as np
from jax import lax
from jax.experimental import pallas as pl
from jax.experimental.pallas import tpu as pltpu


def _cdiv(a: int, b: int) -> int:
    return -(-a // b)


def _round_up(x: int, m: int) -> int:
    return (x + m - 1) // m * m


def _mpu_v1_kernel(*refs, has_aux: bool, eps: float):
    """One row tile: LayerNorm(cat(u,p)) -> ReLU -> Linear -> sigmoid-mean gate -> gated out."""
    if has_aux:
        (u_ref, p_ref, aux_ref, gu_ref, gp_ref, bu_ref, bp_ref,
         wu_ref, wp_ref, bias_ref, out_ref, gate_ref) = refs
    else:
        (u_ref, p_ref, gu_ref, gp_ref, bu_ref, bp_ref,
         wu_ref, wp_ref, bias_ref, out_ref, gate_ref) = refs
        aux_ref = None

    # Inputs stream in their native dtype; LN math in f32.
    u = u_ref[...].astype(jnp.float32)          # (TM, D)
    p = p_ref[...].astype(jnp.float32)          # (TM, D)
    two_d = u.shape[1] + p.shape[1]
    inv_two_d = 1.0 / float(two_d)

    # LayerNorm over the (virtual) concatenated feature dim == torch.cat([u, p], 1).
    mean = (jnp.sum(u, axis=-1, keepdims=True) +
            jnp.sum(p, axis=-1, keepdims=True)) * inv_two_d
    uc = u - mean
    pc = p - mean
    var = (jnp.sum(uc * uc, axis=-1, keepdims=True) +
           jnp.sum(pc * pc, axis=-1, keepdims=True)) * inv_two_d
    inv_std = lax.rsqrt(var + eps)
    xu = jnp.maximum(uc * inv_std * gu_ref[...] + bu_ref[...], 0.0)   # ReLU(LN)[:, :D]
    xp = jnp.maximum(pc * inv_std * gp_ref[...] + bp_ref[...], 0.0)   # ReLU(LN)[:, D:]

    # Linear(2D -> F) with K split (identical math to one matmul on the concat);
    # weights already in MXU dtype, activations cast here, f32 accumulate.
    cdt = wu_ref.dtype
    h = (jnp.dot(xu.astype(cdt), wu_ref[...], preferred_element_type=jnp.float32) +
         jnp.dot(xp.astype(cdt), wp_ref[...], preferred_element_type=jnp.float32) +
         bias_ref[...])                                               # (TM, F) f32

    # sigmoid = 1 / (1 + exp(-h)); exp and approx reciprocal both ride the EUP slot.
    g = pl.reciprocal(1.0 + jnp.exp(-h), approx=True)
    gate = jnp.mean(g, axis=-1, keepdims=True)                        # (TM, 1)
    if aux_ref is not None:
        gate = gate * aux_ref[...].astype(jnp.float32)

    gate_ref[...] = gate
    out_ref[...] = (p * gate).astype(out_ref.dtype)                   # per-row gating


def message_passing_unit_v1(unary_term, pair_term, ln_gamma, ln_beta, w, b,
                            aux_gate=None, *, block_rows=1024,
                            matmul_dtype=jnp.bfloat16, eps=1e-5):
    """JAX wrapper reproducing MessagePassingUnit_v1.forward.

    w is the nn.Linear(2*input_dim, filter_dim) weight stored transposed: (2D, F).
    ln_gamma / ln_beta are the LayerNorm(2*input_dim) affine params: (2D,).
    Returns (output, gate) with gate shape (N,) if F > 1 else (N, 1), matching torch.
    """
    # torch-style batch expansion (glue, stays in plain JAX).
    if unary_term.shape[0] == 1 and pair_term.shape[0] > 1:
        unary_term = jnp.broadcast_to(unary_term,
                                      (pair_term.shape[0], unary_term.shape[1]))
    if unary_term.shape[0] > 1 and pair_term.shape[0] == 1:
        pair_term = jnp.broadcast_to(pair_term,
                                     (unary_term.shape[0], pair_term.shape[1]))

    N, D = pair_term.shape
    assert unary_term.shape == (N, D)
    two_d, F_ = w.shape
    assert two_d == 2 * D, "Linear weight must be (2*input_dim, filter_dim)"

    # Row tile: as big as reasonable to amortize per-grid-step overhead; cap so the
    # grid has >= 2 steps on v7x (2 TensorCores, grid sharded via "parallel") when
    # there is enough work.  No padding: cdiv grid, ragged last block hangs off.
    tm = min(block_rows, _round_up(N, 8))
    if N >= 1024:
        tm = min(tm, _round_up(_cdiv(N, 2), 8))
    grid = (_cdiv(N, tm),)

    # Split LN affine params and the Linear weight along the concat axis so the kernel
    # never materialises torch.cat([u, p], 1).
    gamma = jnp.asarray(ln_gamma, jnp.float32).reshape(1, two_d)
    beta = jnp.asarray(ln_beta, jnp.float32).reshape(1, two_d)
    g_u, g_p = gamma[:, :D], gamma[:, D:]
    b_u, b_p = beta[:, :D], beta[:, D:]
    w_cast = jnp.asarray(w, matmul_dtype)        # bf16 MXU inputs (f32 accumulate)
    w_u, w_p = w_cast[:D, :], w_cast[D:, :]
    bias = jnp.asarray(b, jnp.float32).reshape(1, F_)

    row_spec = pl.BlockSpec((tm, D), lambda i: (i, 0))
    col1_spec = pl.BlockSpec((tm, 1), lambda i: (i, 0))

    def const_spec(shape):
        return pl.BlockSpec(shape, lambda i: (0, 0))   # VMEM-resident across grid steps

    inputs = [unary_term, pair_term]                    # native dtype, no wrapper cast
    in_specs = [row_spec, row_spec]
    has_aux = aux_gate is not None
    if has_aux:
        inputs.append(jnp.asarray(aux_gate).reshape(N, 1))
        in_specs.append(col1_spec)
    inputs += [g_u, g_p, b_u, b_p, w_u, w_p, bias]
    in_specs += [const_spec((1, D)), const_spec((1, D)),
                 const_spec((1, D)), const_spec((1, D)),
                 const_spec((D, F_)), const_spec((D, F_)),
                 const_spec((1, F_))]

    kernel = functools.partial(_mpu_v1_kernel, has_aux=has_aux, eps=float(eps))

    out, gate = pl.pallas_call(
        kernel,
        out_shape=(jax.ShapeDtypeStruct((N, D), pair_term.dtype),
                   jax.ShapeDtypeStruct((N, 1), jnp.float32)),
        grid=grid,
        in_specs=in_specs,
        out_specs=(row_spec, col1_spec),
        # pair_term (input index 1) is fully read into VMEM before the gated output of
        # the same block is written back -> safe in-place update, one less HBM buffer.
        input_output_aliases={1: 0},
        compiler_params=pltpu.CompilerParams(
            dimension_semantics=("parallel",),
            vmem_limit_bytes=32 * 1024 * 1024),
    )(*inputs)

    gate = gate[:, 0] if F_ > 1 else gate     # torch: mean-squeeze only when F > 1
    return out, gate


def _reference(unary_term, pair_term, ln_gamma, ln_beta, w, b, aux_gate=None, eps=1e-5):
    """Pure-JAX reference mirroring the PyTorch forward (for verification)."""
    if unary_term.shape[0] == 1 and pair_term.shape[0] > 1:
        unary_term = jnp.broadcast_to(unary_term,
                                      (pair_term.shape[0], unary_term.shape[1]))
    if unary_term.shape[0] > 1 and pair_term.shape[0] == 1:
        pair_term = jnp.broadcast_to(pair_term,
                                     (unary_term.shape[0], pair_term.shape[1]))
    x = jnp.concatenate([unary_term, pair_term], axis=1).astype(jnp.float32)
    mean = jnp.mean(x, axis=1, keepdims=True)
    var = jnp.mean(jnp.square(x - mean), axis=1, keepdims=True)
    xn = (x - mean) * lax.rsqrt(var + eps) * ln_gamma.reshape(1, -1) + ln_beta.reshape(1, -1)
    h = jnp.dot(jnp.maximum(xn, 0.0), w, precision=lax.Precision.HIGHEST) + b.reshape(1, -1)
    g = jax.nn.sigmoid(h)
    gate = jnp.mean(g, axis=1) if g.shape[1] > 1 else g   # torch keeps (N,1) for F==1
    if aux_gate is not None:
        gate = gate * aux_gate
    out = pair_term.astype(jnp.float32) * gate.reshape(-1, 1)
    return out, gate


if __name__ == "__main__":
    # Shapes consistent with the module: input_dim=64, filter_dim=64 (default),
    # N=200 edges.
    N, D, F_ = 200, 64, 64

    key = jax.random.PRNGKey(0)
    ks = jax.random.split(key, 9)
    u_np = np.asarray(jax.random.normal(ks[0], (N, D), dtype=jnp.float32))
    p_np = np.asarray(jax.random.normal(ks[1], (N, D), dtype=jnp.float32))
    gamma_np = np.asarray(1.0 + 0.05 * jax.random.normal(ks[2], (2 * D,), dtype=jnp.float32))
    beta_np = np.asarray(0.05 * jax.random.normal(ks[3], (2 * D,), dtype=jnp.float32))
    # nn.Linear(2D, F): torch weight is (F, 2D); stored here pre-transposed (2D, F).
    w_np = np.asarray(0.05 * jax.random.normal(ks[4], (2 * D, F_), dtype=jnp.float32))
    b_np = np.asarray(0.1 * jax.random.normal(ks[5], (F_,), dtype=jnp.float32))
    aux_np = np.asarray(jax.random.uniform(ks[6], (N,), dtype=jnp.float32))

    params = lambda: (jnp.asarray(gamma_np), jnp.asarray(beta_np),
                      jnp.asarray(w_np), jnp.asarray(b_np))

    # Gold references (computed first; kernel inputs are recreated per call because
    # pair_term may be donated to the output via input_output_aliases).
    out_ref_np, gate_ref_np = map(np.asarray, _reference(
        jnp.asarray(u_np), jnp.asarray(p_np), *params()))
    out_ref_aux_np, gate_ref_aux_np = map(np.asarray, _reference(
        jnp.asarray(u_np), jnp.asarray(p_np), *params(), aux_gate=jnp.asarray(aux_np)))

    def run(u, p, matmul_dtype, aux=None, **kw):
        out, gate = message_passing_unit_v1(
            jnp.asarray(u), jnp.asarray(p), *params(),
            aux_gate=None if aux is None else jnp.asarray(aux),
            matmul_dtype=matmul_dtype, **kw)
        jax.block_until_ready((out, gate))
        return np.asarray(out, dtype=np.float32), np.asarray(gate, dtype=np.float32)

    # 1) f32 MXU path, f32 inputs: tight-ish check against the f32 reference.
    out, gate = run(u_np, p_np, jnp.float32)
    assert out.shape == (N, D) and gate.shape == (N,)
    np.testing.assert_allclose(out, out_ref_np, rtol=1e-2, atol=1e-2)
    np.testing.assert_allclose(gate, gate_ref_np, rtol=1e-2, atol=1e-2)

    # 2) Default bf16 MXU path (f32 accumulate): looser tolerance.
    out, gate = run(u_np, p_np, jnp.bfloat16)
    np.testing.assert_allclose(out, out_ref_np, rtol=3e-2, atol=3e-2)
    np.testing.assert_allclose(gate, gate_ref_np, rtol=3e-2, atol=3e-2)

    # 3) aux_gate path.
    out, gate = run(u_np, p_np, jnp.bfloat16, aux=aux_np)
    np.testing.assert_allclose(out, out_ref_aux_np, rtol=3e-2, atol=3e-2)
    np.testing.assert_allclose(gate, gate_ref_aux_np, rtol=3e-2, atol=3e-2)

    # 4) Native bf16 streaming: inputs arrive in bf16, no wrapper f32 cast / extra pass.
    u_bf = np.asarray(jnp.asarray(u_np).astype(jnp.bfloat16))
    p_bf = np.asarray(jnp.asarray(p_np).astype(jnp.bfloat16))
    out_ref_bf, gate_ref_bf = map(np.asarray, _reference(
        jnp.asarray(u_bf).astype(jnp.float32), jnp.asarray(p_bf).astype(jnp.float32),
        *params()))
    out, gate = run(u_bf, p_bf, jnp.bfloat16)
    np.testing.assert_allclose(out, out_ref_bf, rtol=3e-2, atol=3e-2)
    np.testing.assert_allclose(gate, gate_ref_bf, rtol=3e-2, atol=3e-2)

    # 5) Multi-tile + ragged last block (no padding pass): N2=1337 rows, 512-row tiles
    #    -> grid of 3 with a 313-row tail block, exercising the v7x-friendly tiling.
    N2 = 1337
    k2 = jax.random.split(jax.random.PRNGKey(7), 2)
    u2_np = np.asarray(jax.random.normal(k2[0], (N2, D), dtype=jnp.float32))
    p2_np = np.asarray(jax.random.normal(k2[1], (N2, D), dtype=jnp.float32))
    out_ref2, gate_ref2 = map(np.asarray, _reference(
        jnp.asarray(u2_np), jnp.asarray(p2_np), *params()))
    out, gate = run(u2_np, p2_np, jnp.float32, block_rows=512)
    assert out.shape == (N2, D) and gate.shape == (N2,)
    np.testing.assert_allclose(out, out_ref2, rtol=1e-2, atol=1e-2)
    np.testing.assert_allclose(gate, gate_ref2, rtol=1e-2, atol=1e-2)

    print("KERNEL_OK")
</pallas_src>

<mosaic_0001>
module attributes {stable_mosaic.version = 11 : i64} {
  func.func @_mpu_v1_kernel(%arg0: i32, %arg1: memref<200x64xf32, #tpu.memory_space<vmem>>, %arg2: memref<200x64xf32, #tpu.memory_space<vmem>>, %arg3: memref<1x64xf32, #tpu.memory_space<vmem>>, %arg4: memref<1x64xf32, #tpu.memory_space<vmem>>, %arg5: memref<1x64xf32, #tpu.memory_space<vmem>>, %arg6: memref<1x64xf32, #tpu.memory_space<vmem>>, %arg7: memref<64x64xf32, #tpu.memory_space<vmem>>, %arg8: memref<64x64xf32, #tpu.memory_space<vmem>>, %arg9: memref<1x64xf32, #tpu.memory_space<vmem>>, %arg10: memref<200x64xf32, #tpu.memory_space<vmem>>, %arg11: memref<200x1xf32, #tpu.memory_space<vmem>>) attributes {dimension_semantics = [#tpu.dimension_semantics<parallel>], iteration_bounds = array<i64: 1>, scalar_prefetch = 0 : i64, scratch_operands = 0 : i64, tpu.core_type = #tpu.core_type<tc>, window_params = [{transform_indices = @transform_0, window_bounds = array<i64: 200, 64>}, {transform_indices = @transform_1, window_bounds = array<i64: 200, 64>}, {pipeline_mode = #tpu.pipeline_mode<synchronous>, transform_indices = @transform_2, window_bounds = array<i64: 1, 64>}, {pipeline_mode = #tpu.pipeline_mode<synchronous>, transform_indices = @transform_3, window_bounds = array<i64: 1, 64>}, {pipeline_mode = #tpu.pipeline_mode<synchronous>, transform_indices = @transform_4, window_bounds = array<i64: 1, 64>}, {pipeline_mode = #tpu.pipeline_mode<synchronous>, transform_indices = @transform_5, window_bounds = array<i64: 1, 64>}, {pipeline_mode = #tpu.pipeline_mode<synchronous>, transform_indices = @transform_6, window_bounds = array<i64: 64, 64>}, {pipeline_mode = #tpu.pipeline_mode<synchronous>, transform_indices = @transform_7, window_bounds = array<i64: 64, 64>}, {pipeline_mode = #tpu.pipeline_mode<synchronous>, transform_indices = @transform_8, window_bounds = array<i64: 1, 64>}, {transform_indices = @transform_9, window_bounds = array<i64: 200, 64>}, {transform_indices = @transform_10, window_bounds = array<i64: 200, 1>}]} {
    %c0 = arith.constant 0 : index
    %c0_0 = arith.constant 0 : index
    %0 = vector.load %arg1[%c0, %c0_0] : memref<200x64xf32, #tpu.memory_space<vmem>>, vector<200x64xf32>
    %c0_1 = arith.constant 0 : index
    %c0_2 = arith.constant 0 : index
    %1 = vector.load %arg2[%c0_1, %c0_2] : memref<200x64xf32, #tpu.memory_space<vmem>>, vector<200x64xf32>
    %cst = arith.constant dense<0.000000e+00> : vector<200xf32>
    %2 = vector.multi_reduction <add>, %0, %cst [1] : vector<200x64xf32> to vector<200xf32>
    %3 = vector.shape_cast %2 : vector<200xf32> to vector<200x1xf32>
    %cst_3 = arith.constant dense<0.000000e+00> : vector<200xf32>
    %4 = vector.multi_reduction <add>, %1, %cst_3 [1] : vector<200x64xf32> to vector<200xf32>
    %5 = vector.shape_cast %4 : vector<200xf32> to vector<200x1xf32>
    %6 = arith.addf %3, %5 : vector<200x1xf32>
    %cst_4 = arith.constant 7.812500e-03 : f32
    %7 = vector.broadcast %cst_4 : f32 to vector<200x1xf32>
    %8 = arith.mulf %6, %7 : vector<200x1xf32>
    %9 = vector.broadcast %8 : vector<200x1xf32> to vector<200x64xf32>
    %10 = arith.subf %0, %9 : vector<200x64xf32>
    %11 = vector.broadcast %8 : vector<200x1xf32> to vector<200x64xf32>
    %12 = arith.subf %1, %11 : vector<200x64xf32>
    %13 = arith.mulf %10, %10 : vector<200x64xf32>
    %cst_5 = arith.constant dense<0.000000e+00> : vector<200xf32>
    %14 = vector.multi_reduction <add>, %13, %cst_5 [1] : vector<200x64xf32> to vector<200xf32>
    %15 = vector.shape_cast %14 : vector<200xf32> to vector<200x1xf32>
    %16 = arith.mulf %12, %12 : vector<200x64xf32>
    %cst_6 = arith.constant dense<0.000000e+00> : vector<200xf32>
    %17 = vector.multi_reduction <add>, %16, %cst_6 [1] : vector<200x64xf32> to vector<200xf32>
    %18 = vector.shape_cast %17 : vector<200xf32> to vector<200x1xf32>
    %19 = arith.addf %15, %18 : vector<200x1xf32>
    %cst_7 = arith.constant 7.812500e-03 : f32
    %20 = vector.broadcast %cst_7 : f32 to vector<200x1xf32>
    %21 = arith.mulf %19, %20 : vector<200x1xf32>
    %cst_8 = arith.constant 9.99999974E-6 : f32
    %22 = vector.broadcast %cst_8 : f32 to vector<200x1xf32>
    %23 = arith.addf %21, %22 : vector<200x1xf32>
    %24 = math.rsqrt %23 : vector<200x1xf32>
    %25 = vector.broadcast %24 : vector<200x1xf32> to vector<200x64xf32>
    %26 = arith.mulf %10, %25 : vector<200x64xf32>
    %c0_9 = arith.constant 0 : index
    %c0_10 = arith.constant 0 : index
    %27 = vector.load %arg3[%c0_9, %c0_10] : memref<1x64xf32, #tpu.memory_space<vmem>>, vector<1x64xf32>
    %28 = vector.broadcast %27 : vector<1x64xf32> to vector<200x64xf32>
    %29 = arith.mulf %26, %28 : vector<200x64xf32>
    %c0_11 = arith.constant 0 : index
    %c0_12 = arith.constant 0 : index
    %30 = vector.load %arg5[%c0_11, %c0_12] : memref<1x64xf32, #tpu.memory_space<vmem>>, vector<1x64xf32>
    %31 = vector.broadcast %30 : vector<1x64xf32> to vector<200x64xf32>
    %32 = arith.addf %29, %31 : vector<200x64xf32>
    %cst_13 = arith.constant 0.000000e+00 : f32
    %33 = vector.broadcast %cst_13 : f32 to vector<200x64xf32>
    %34 = arith.maximumf %32, %33 : vector<200x64xf32>
    %35 = vector.broadcast %24 : vector<200x1xf32> to vector<200x64xf32>
    %36 = arith.mulf %12, %35 : vector<200x64xf32>
    %c0_14 = arith.constant 0 : index
    %c0_15 = arith.constant 0 : index
    %37 = vector.load %arg4[%c0_14, %c0_15] : memref<1x64xf32, #tpu.memory_space<vmem>>, vector<1x64xf32>
    %38 = vector.broadcast %37 : vector<1x64xf32> to vector<200x64xf32>
    %39 = arith.mulf %36, %38 : vector<200x64xf32>
    %c0_16 = arith.constant 0 : index
    %c0_17 = arith.constant 0 : index
    %40 = vector.load %arg6[%c0_16, %c0_17] : memref<1x64xf32, #tpu.memory_space<vmem>>, vector<1x64xf32>
    %41 = vector.broadcast %40 : vector<1x64xf32> to vector<200x64xf32>
    %42 = arith.addf %39, %41 : vector<200x64xf32>
    %cst_18 = arith.constant 0.000000e+00 : f32
    %43 = vector.broadcast %cst_18 : f32 to vector<200x64xf32>
    %44 = arith.maximumf %42, %43 : vector<200x64xf32>
    %c0_19 = arith.constant 0 : index
    %c0_20 = arith.constant 0 : index
    %45 = vector.load %arg7[%c0_19, %c0_20] : memref<64x64xf32, #tpu.memory_space<vmem>>, vector<64x64xf32>
    %cst_21 = arith.constant dense<0.000000e+00> : vector<200x64xf32>
    %46 = tpu.matmul %34, %45, %cst_21 {dimension_numbers = #tpu.dot_dimension_numbers<[1], [0], [0], [1], [0, 0, 1, 1], [], []>} : vector<200x64xf32>, vector<64x64xf32>, vector<200x64xf32> -> vector<200x64xf32>
    %c0_22 = arith.constant 0 : index
    %c0_23 = arith.constant 0 : index
    %47 = vector.load %arg8[%c0_22, %c0_23] : memref<64x64xf32, #tpu.memory_space<vmem>>, vector<64x64xf32>
    %cst_24 = arith.constant dense<0.000000e+00> : vector<200x64xf32>
    %48 = tpu.matmul %44, %47, %cst_24 {dimension_numbers = #tpu.dot_dimension_numbers<[1], [0], [0], [1], [0, 0, 1, 1], [], []>} : vector<200x64xf32>, vector<64x64xf32>, vector<200x64xf32> -> vector<200x64xf32>
    %49 = arith.addf %46, %48 : vector<200x64xf32>
    %c0_25 = arith.constant 0 : index
    %c0_26 = arith.constant 0 : index
    %50 = vector.load %arg9[%c0_25, %c0_26] : memref<1x64xf32, #tpu.memory_space<vmem>>, vector<1x64xf32>
    %51 = vector.broadcast %50 : vector<1x64xf32> to vector<200x64xf32>
    %52 = arith.addf %49, %51 : vector<200x64xf32>
    %cst_27 = arith.constant 0.000000e+00 : f32
    %53 = vector.broadcast %cst_27 : f32 to vector<200x64xf32>
    %54 = arith.subf %53, %52 : vector<200x64xf32>
    %55 = math.exp %54 : vector<200x64xf32>
    %cst_28 = arith.constant 1.000000e+00 : f32
    %56 = vector.broadcast %cst_28 : f32 to vector<200x64xf32>
    %57 = arith.addf %56, %55 : vector<200x64xf32>
    %58 = tpu.reciprocal %57 {approx = true} : vector<200x64xf32> -> vector<200x64xf32>
    %cst_29 = arith.constant dense<0.000000e+00> : vector<200xf32>
    %59 = vector.multi_reduction <add>, %58, %cst_29 [1] : vector<200x64xf32> to vector<200xf32>
    %60 = vector.shape_cast %59 : vector<200xf32> to vector<200x1xf32>
    %cst_30 = arith.constant 6.400000e+01 : f32
    %61 = vector.broadcast %cst_30 : f32 to vector<200x1xf32>
    %62 = arith.divf %60, %61 : vector<200x1xf32>
    %c0_31 = arith.constant 0 : index
    %c0_32 = arith.constant 0 : index
    %63 = vector.load %arg11[%c0_31, %c0_32] : memref<200x1xf32, #tpu.memory_space<vmem>>, vector<200x1xf32>
    tpu.vector_store %arg11[%c0_31, %c0_32], %62 {strides = array<i32>} : memref<200x1xf32, #tpu.memory_space<vmem>>, vector<200x1xf32>,
    %64 = vector.broadcast %62 : vector<200x1xf32> to vector<200x64xf32>
    %65 = arith.mulf %1, %64 : vector<200x64xf32>
    %c0_33 = arith.constant 0 : index
    %c0_34 = arith.constant 0 : index
    %66 = vector.load %arg10[%c0_33, %c0_34] : memref<200x64xf32, #tpu.memory_space<vmem>>, vector<200x64xf32>
    tpu.vector_store %arg10[%c0_33, %c0_34], %65 {strides = array<i32>} : memref<200x64xf32, #tpu.memory_space<vmem>>, vector<200x64xf32>,
    return
  }
  func.func @transform_0(%arg0: i32) -> (i32, i32) {
    %c0_i32 = arith.constant 0 : i32
    %c0_i32_0 = arith.constant 0 : i32
    return %arg0, %c0_i32 : i32, i32
  }
  func.func @transform_1(%arg0: i32) -> (i32, i32) {
    %c0_i32 = arith.constant 0 : i32
    %c0_i32_0 = arith.constant 0 : i32
    return %arg0, %c0_i32 : i32, i32
  }
  func.func @transform_2(%arg0: i32) -> (i32, i32) {
    %c0_i32 = arith.constant 0 : i32
    %c0_i32_0 = arith.constant 0 : i32
    %c0_i32_1 = arith.constant 0 : i32
    return %c0_i32, %c0_i32_0 : i32, i32
  }
  func.func @transform_3(%arg0: i32) -> (i32, i32) {
    %c0_i32 = arith.constant 0 : i32
    %c0_i32_0 = arith.constant 0 : i32
    %c0_i32_1 = arith.constant 0 : i32
    return %c0_i32, %c0_i32_0 : i32, i32
  }
  func.func @transform_4(%arg0: i32) -> (i32, i32) {
    %c0_i32 = arith.constant 0 : i32
    %c0_i32_0 = arith.constant 0 : i32
    %c0_i32_1 = arith.constant 0 : i32
    return %c0_i32, %c0_i32_0 : i32, i32
  }
  func.func @transform_5(%arg0: i32) -> (i32, i32) {
    %c0_i32 = arith.constant 0 : i32
    %c0_i32_0 = arith.constant 0 : i32
    %c0_i32_1 = arith.constant 0 : i32
    return %c0_i32, %c0_i32_0 : i32, i32
  }
  func.func @transform_6(%arg0: i32) -> (i32, i32) {
    %c0_i32 = arith.constant 0 : i32
    %c0_i32_0 = arith.constant 0 : i32
    %c0_i32_1 = arith.constant 0 : i32
    return %c0_i32, %c0_i32_0 : i32, i32
  }
  func.func @transform_7(%arg0: i32) -> (i32, i32) {
    %c0_i32 = arith.constant 0 : i32
    %c0_i32_0 = arith.constant 0 : i32
    %c0_i32_1 = arith.constant 0 : i32
    return %c0_i32, %c0_i32_0 : i32, i32
  }
  func.func @transform_8(%arg0: i32) -> (i32, i32) {
    %c0_i32 = arith.constant 0 : i32
    %c0_i32_0 = arith.constant 0 : i32
    %c0_i32_1 = arith.constant 0 : i32
    return %c0_i32, %c0_i32_0 : i32, i32
  }
  func.func @transform_9(%arg0: i32) -> (i32, i32) {
    %c0_i32 = arith.constant 0 : i32
    %c0_i32_0 = arith.constant 0 : i32
    return %arg0, %c0_i32 : i32, i32
  }
  func.func @transform_10(%arg0: i32) -> (i32, i32) {
    %c0_i32 = arith.constant 0 : i32
    %c0_i32_0 = arith.constant 0 : i32
    return %arg0, %c0_i32 : i32, i32
  }
}

</mosaic_0001>

<bundles_post_ra>
// kernel: tpu_custom_call.1
= control target key start
LH: loop header
LB: loop body
LE: loop exit
PB: predicated region body
PF: predicated region fallthrough
CT: control target
= control target key end

     0   :  { %vm84_vm0 = vcmask 523264   ;;  %vm2232_vm1 = vmmov 0   ;;  %vm1667_vm2 = vcmask 7168   ;;  %s3652_s0 = inlined_call_operand.vmem [shape: f32[200,64], index: 0, kind: input, shape index: {}]   ;;  %s3653_s1 = inlined_call_operand.vmem [shape: f32[200,64], index: 1, kind: input, shape index: {}, may-alias: {1,9}]   ;;  %s3654_s7 = inlined_call_operand.vmem [shape: f32[64,64], index: 7, kind: input, shape index: {}]   ;;  %s3655_s6 = inlined_call_operand.vmem [shape: f32[64,64], index: 6, kind: input, shape index: {}]   ;;  %s3656_s3 = inlined_call_operand.vmem [shape: f32[1,64], index: 3, kind: input, shape index: {}]   ;;  %s3657_s2 = inlined_call_operand.vmem [shape: f32[1,64], index: 2, kind: input, shape index: {}]   ;;  %s3658_s5 = inlined_call_operand.vmem [shape: f32[1,64], index: 5, kind: input, shape index: {}]   ;;  %s3659_s4 = inlined_call_operand.vmem [shape: f32[1,64], index: 4, kind: input, shape index: {}]   ;;  %s3660_s8 = inlined_call_operand.vmem [shape: f32[1,64], index: 8, kind: input, shape index: {}]   ;;  %s3661_s10 = inlined_call_operand.vmem [shape: f32[200,1], index: 10, kind: output, shape index: {1}]   ;;  %s3662_s9 = inlined_call_operand.vmem [shape: f32[200,64], index: 9, kind: output, shape index: {0}, may-alias: {1,9}]  }
   0x1   :  { %v2291_v0 = vld [vmem:[%s3652_s0 + $0x8] sm:$0xff]  ;;  %v2296_v1 = vld [vmem:[%s3652_s0] sm:$0xff]  ;;  %v2319_v8 = vld [vmem:[%s3653_s1 + $0x10] sm:$0xff] }
   0x2   :  { %v2301_v2 = vld [vmem:[%s3653_s1 + $0x8] sm:$0xff]  ;;  %v88_v3 = vsel %vm84_vm0, %v2291_v0, 0.0  ;;  %v85_v4 = vsel %vm84_vm0, %v2296_v1, 0.0  ;;  %v2310_v5 = vld [vmem:[%s3653_s1] sm:$0xff]  ;;  %v2324_v9 = vld [vmem:[%s3652_s0 + $0x10] sm:$0xff]  ;;  %v166_v10 = vsel %vm84_vm0, %v2319_v8, 0.0 }
   0x3   :  { %89 = vadd.xlane.f32.xlu1 %v88_v3  ;;  %86 = vadd.xlane.f32.xlu0 %v85_v4  ;;  %v163_v6 = vsel %vm84_vm0, %v2301_v2, 0.0  ;;  %v160_v7 = vsel %vm84_vm0, %v2310_v5, 0.0  ;;  %v91_v11 = vsel %vm84_vm0, %v2324_v9, 0.0  ;;  %v2333_v12 = vld [vmem:[%s3653_s1 + $0x18] sm:$0xff]  ;;  %v2347_v16 = vld [vmem:[%s3653_s1 + $0x20] sm:$0xff]  ;;  %v2361_v20 = vld [vmem:[%s3653_s1 + $0x28] sm:$0xff] }
   0x4   :  { %v2338_v13 = vld [vmem:[%s3652_s0 + $0x18] sm:$0xff]  ;;  %v169_v14 = vsel %vm84_vm0, %v2333_v12, 0.0  ;;  %v2352_v17 = vld [vmem:[%s3652_s0 + $0x20] sm:$0xff]  ;;  %v172_v18 = vsel %vm84_vm0, %v2347_v16, 0.0  ;;  %v2366_v21 = vld [vmem:[%s3652_s0 + $0x28] sm:$0xff]  ;;  %v175_v22 = vsel %vm84_vm0, %v2361_v20, 0.0 }
   0x5   :  { %v94_v15 = vsel %vm84_vm0, %v2338_v13, 0.0  ;;  %v97_v19 = vsel %vm84_vm0, %v2352_v17, 0.0  ;;  %v100_v23 = vsel %vm84_vm0, %v2366_v21, 0.0  ;;  %v2375_v24 = vld [vmem:[%s3653_s1 + $0x30] sm:$0xff]  ;;  %v2389_v28 = vld [vmem:[%s3653_s1 + $0x38] sm:$0xff]  ;;  %v2403_v32 = vld [vmem:[%s3653_s1 + $0x40] sm:$0xff] }
   0x6   :  { %v2380_v25 = vld [vmem:[%s3652_s0 + $0x30] sm:$0xff]  ;;  %v178_v26 = vsel %vm84_vm0, %v2375_v24, 0.0  ;;  %v2394_v29 = vld [vmem:[%s3652_s0 + $0x38] sm:$0xff]  ;;  %v181_v30 = vsel %vm84_vm0, %v2389_v28, 0.0  ;;  %v2408_v33 = vld [vmem:[%s3652_s0 + $0x40] sm:$0xff]  ;;  %v184_v34 = vsel %vm84_vm0, %v2403_v32, 0.0 }
   0x7   :  { %164 = vadd.xlane.f32.xlu1 %v163_v6  ;;  %161 = vadd.xlane.f32.xlu0 %v160_v7  ;;  %v103_v27 = vsel %vm84_vm0, %v2380_v25, 0.0  ;;  %v106_v31 = vsel %vm84_vm0, %v2394_v29, 0.0  ;;  %v109_v35 = vsel %vm84_vm0, %v2408_v33, 0.0  ;;  %v2417_v36 = vld [vmem:[%s3653_s1 + $0x48] sm:$0xff]  ;;  %v2431_v40 = vld [vmem:[%s3653_s1 + $0x50] sm:$0xff]  ;;  %v2445_v44 = vld [vmem:[%s3653_s1 + $0x58] sm:$0xff] }
   0x8   :  { %v2422_v37 = vld [vmem:[%s3652_s0 + $0x48] sm:$0xff]  ;;  %v187_v38 = vsel %vm84_vm0, %v2417_v36, 0.0  ;;  %v2436_v41 = vld [vmem:[%s3652_s0 + $0x50] sm:$0xff]  ;;  %v190_v42 = vsel %vm84_vm0, %v2431_v40, 0.0  ;;  %v2450_v45 = vld [vmem:[%s3652_s0 + $0x58] sm:$0xff]  ;;  %v193_v46 = vsel %vm84_vm0, %v2445_v44, 0.0 }
   0x9   :  { %v112_v39 = vsel %vm84_vm0, %v2422_v37, 0.0  ;;  %v115_v43 = vsel %vm84_vm0, %v2436_v41, 0.0  ;;  %v118_v47 = vsel %vm84_vm0, %v2450_v45, 0.0  ;;  %v2459_v48 = vld [vmem:[%s3653_s1 + $0x60] sm:$0xff]  ;;  %v2473_v52 = vld [vmem:[%s3653_s1 + $0x68] sm:$0xff]  ;;  %v2487_v56 = vld [vmem:[%s3653_s1 + $0x70] sm:$0xff] }
   0xa   :  { %v2464_v49 = vld [vmem:[%s3652_s0 + $0x60] sm:$0xff]  ;;  %v196_v50 = vsel %vm84_vm0, %v2459_v48, 0.0  ;;  %v2478_v53 = vld [vmem:[%s3652_s0 + $0x68] sm:$0xff]  ;;  %v199_v54 = vsel %vm84_vm0, %v2473_v52, 0.0  ;;  %v2492_v57 = vld [vmem:[%s3652_s0 + $0x70] sm:$0xff]  ;;  %v202_v58 = vsel %vm84_vm0, %v2487_v56, 0.0 }
   0xb   :  { %167 = vadd.xlane.f32.xlu1 %v166_v10  ;;  %92 = vadd.xlane.f32.xlu0 %v91_v11  ;;  %v121_v51 = vsel %vm84_vm0, %v2464_v49, 0.0  ;;  %v124_v55 = vsel %vm84_vm0, %v2478_v53, 0.0  ;;  %v127_v59 = vsel %vm84_vm0, %v2492_v57, 0.0  ;;  %v2501_v60 = vld [vmem:[%s3653_s1 + $0x78] sm:$0xff]  ;;  %v2515_v3 = vld [vmem:[%s3653_s1 + $0x80] sm:$0xff]  ;;  %v2529_v10 = vld [vmem:[%s3653_s1 + $0x88] sm:$0xff] }
   0xc   :  { %v2506_v61 = vld [vmem:[%s3652_s0 + $0x78] sm:$0xff]  ;;  %v205_v62 = vsel %vm84_vm0, %v2501_v60, 0.0  ;;  %v2520_v4 = vld [vmem:[%s3652_s0 + $0x80] sm:$0xff]  ;;  %v208_v6 = vsel %vm84_vm0, %v2515_v3, 0.0  ;;  %v2534_v11 = vld [vmem:[%s3652_s0 + $0x88] sm:$0xff] }
   0xd   :  { %v130_v63 = vsel %vm84_vm0, %v2506_v61, 0.0  ;;  %v133_v7 = vsel %vm84_vm0, %v2520_v4, 0.0 }
   0xf   :  { %170 = vadd.xlane.f32.xlu1 %v169_v14  ;;  %95 = vadd.xlane.f32.xlu0 %v94_v15  ;;  %v211_v14 = vsel %vm84_vm0, %v2529_v10, 0.0  ;;  %v136_v15 = vsel %vm84_vm0, %v2534_v11, 0.0 }
  0x13   :  { %173 = vadd.xlane.f32.xlu1 %v172_v18  ;;  %98 = vadd.xlane.f32.xlu0 %v97_v19  ;;  %v2543_v18 = vld [vmem:[%s3653_s1 + $0x90] sm:$0xff] }
  0x14   :  { %v2548_v19 = vld [vmem:[%s3652_s0 + $0x90] sm:$0xff] }
  0x17   :  { %176 = vadd.xlane.f32.xlu1 %v175_v22  ;;  %101 = vadd.xlane.f32.xlu0 %v100_v23  ;;  %v214_v22 = vsel %vm84_vm0, %v2543_v18, 0.0  ;;  %v139_v23 = vsel %vm84_vm0, %v2548_v19, 0.0 }
  0x1b   :  { %179 = vadd.xlane.f32.xlu1 %v178_v26  ;;  %104 = vadd.xlane.f32.xlu0 %v103_v27  ;;  %v2557_v26 = vld [vmem:[%s3653_s1 + $0x98] sm:$0xff] }
  0x1c   :  { %v2562_v27 = vld [vmem:[%s3652_s0 + $0x98] sm:$0xff] }
  0x1f   :  { %182 = vadd.xlane.f32.xlu1 %v181_v30  ;;  %107 = vadd.xlane.f32.xlu0 %v106_v31  ;;  %v217_v30 = vsel %vm84_vm0, %v2557_v26, 0.0  ;;  %v142_v31 = vsel %vm84_vm0, %v2562_v27, 0.0 }
  0x23   :  { %185 = vadd.xlane.f32.xlu1 %v184_v34  ;;  %110 = vadd.xlane.f32.xlu0 %v109_v35  ;;  %v2571_v34 = vld [vmem:[%s3653_s1 + $0xa0] sm:$0xff] }
  0x24   :  { %v2576_v35 = vld [vmem:[%s3652_s0 + $0xa0] sm:$0xff] }
  0x27   :  { %188 = vadd.xlane.f32.xlu1 %v187_v38  ;;  %113 = vadd.xlane.f32.xlu0 %v112_v39  ;;  %v220_v38 = vsel %vm84_vm0, %v2571_v34, 0.0  ;;  %v145_v39 = vsel %vm84_vm0, %v2576_v35, 0.0 }
  0x2b   :  { %191 = vadd.xlane.f32.xlu1 %v190_v42  ;;  %116 = vadd.xlane.f32.xlu0 %v115_v43  ;;  %v2585_v42 = vld [vmem:[%s3653_s1 + $0xa8] sm:$0xff] }
  0x2c   :  { %v2590_v43 = vld [vmem:[%s3652_s0 + $0xa8] sm:$0xff] }
  0x2f   :  { %194 = vadd.xlane.f32.xlu1 %v193_v46  ;;  %119 = vadd.xlane.f32.xlu0 %v118_v47  ;;  %v223_v46 = vsel %vm84_vm0, %v2585_v42, 0.0  ;;  %v148_v47 = vsel %vm84_vm0, %v2590_v43, 0.0 }
  0x33   :  { %197 = vadd.xlane.f32.xlu1 %v196_v50  ;;  %122 = vadd.xlane.f32.xlu0 %v121_v51  ;;  %v2599_v50 = vld [vmem:[%s3653_s1 + $0xb0] sm:$0xff] }
  0x34   :  { %v2604_v51 = vld [vmem:[%s3652_s0 + $0xb0] sm:$0xff] }
  0x37   :  { %200 = vadd.xlane.f32.xlu1 %v199_v54  ;;  %125 = vadd.xlane.f32.xlu0 %v124_v55  ;;  %v226_v54 = vsel %vm84_vm0, %v2599_v50, 0.0  ;;  %v151_v55 = vsel %vm84_vm0, %v2604_v51, 0.0 }
  0x3b   :  { %203 = vadd.xlane.f32.xlu1 %v202_v58  ;;  %128 = vadd.xlane.f32.xlu0 %v127_v59  ;;  %v2613_v58 = vld [vmem:[%s3653_s1 + $0xb8] sm:$0xff] }
  0x3c   :  { %v2618_v59 = vld [vmem:[%s3652_s0 + $0xb8] sm:$0xff] }
  0x3f   :  { %206 = vadd.xlane.f32.xlu1 %v205_v62  ;;  %131 = vadd.xlane.f32.xlu0 %v130_v63  ;;  %v229_v62 = vsel %vm84_vm0, %v2613_v58, 0.0  ;;  %v154_v63 = vsel %vm84_vm0, %v2618_v59, 0.0 }
  0x43   :  { %209 = vadd.xlane.f32.xlu1 %v208_v6  ;;  %134 = vadd.xlane.f32.xlu0 %v133_v7  ;;  %v2627_v6 = vld [vmem:[%s3653_s1 + $0xc0] sm:$0xff] }
  0x44   :  { %3674 = vst [vmem:[#allocation2_spill] sm:$0xff] %v2627_v6  ;;  %v2632_v7 = vld [vmem:[%s3652_s0 + $0xc0] sm:$0xff] }
  0x47   :  { %212 = vadd.xlane.f32.xlu1 %v211_v14  ;;  %137 = vadd.xlane.f32.xlu0 %v136_v15  ;;  %v232_v14 = vsel %vm84_vm0, %v2627_v6, 0.0  ;;  %v157_v15 = vsel %vm84_vm0, %v2632_v7, 0.0 }
  0x4b   :  { %215 = vadd.xlane.f32.xlu1 %v214_v22  ;;  %140 = vadd.xlane.f32.xlu0 %v139_v23 }
  0x4f   :  { %218 = vadd.xlane.f32.xlu1 %v217_v30  ;;  %143 = vadd.xlane.f32.xlu0 %v142_v31 }
  0x53   :  { %221 = vadd.xlane.f32.xlu1 %v220_v38  ;;  %146 = vadd.xlane.f32.xlu0 %v145_v39 }
  0x57   :  { %224 = vadd.xlane.f32.xlu1 %v223_v46  ;;  %149 = vadd.xlane.f32.xlu0 %v148_v47 }
  0x5b   :  { %227 = vadd.xlane.f32.xlu1 %v226_v54  ;;  %152 = vadd.xlane.f32.xlu0 %v151_v55 }
  0x5f   :  { %230 = vadd.xlane.f32.xlu1 %v229_v62  ;;  %155 = vadd.xlane.f32.xlu0 %v154_v63 }
  0x63   :  { %233 = vadd.xlane.f32.xlu1 %v232_v14  ;;  %158 = vadd.xlane.f32.xlu0 %v157_v15 }
  0x8c   :  { %v90_v22 = vpop.xlane.xlu1 %89  ;;  %v87_v23 = vpop.xlane.xlu0 %86 }
  0x90   :  { %v165_v30 = vpop.xlane.xlu1 %164  ;;  %v162_v31 = vpop.xlane.xlu0 %161 }
  0x91   :  { %v236_v38 = vadd.f32 %v165_v30, %v90_v22  ;;  %v235_v39 = vadd.f32 %v162_v31, %v87_v23 }
  0x93   :  { %v261_v46 = vmul.f32 0.0078125, %v236_v38  ;;  %v260_v47 = vmul.f32 0.0078125, %v235_v39 }
  0x94   :  { %v168_v54 = vpop.xlane.xlu1 %167  ;;  %v93_v55 = vpop.xlane.xlu0 %92 }
  0x95   :  { %v2639_v62 = vsub.f32 %v2291_v0, %v261_v46  ;;  %v2642_v63 = vsub.f32 %v2301_v2, %v261_v46  ;;  %v2645_v6 = vsub.f32 %v2296_v1, %v260_v47  ;;  %v2648_v14 = vsub.f32 %v2310_v5, %v260_v47 }
  0x96   :  { %v237_v15 = vadd.f32 %v168_v54, %v93_v55 }
  0x97   :  { %3675 = vst [vmem:[#allocation3_spill] sm:$0xff] %v2642_v63  ;;  %v435_v22 = vmul.f32 %v2648_v14, %v2648_v14  ;;  %v335_v23 = vmul.f32 %v2645_v6, %v2645_v6  ;;  %v436_v2 = vmul.f32 %v2642_v63, %v2642_v63  ;;  %v336_v5 = vmul.f32 %v2639_v62, %v2639_v62 }
  0x98   :  { %v262_v30 = vmul.f32 0.0078125, %v237_v15  ;;  %v171_v31 = vpop.xlane.xlu1 %170  ;;  %v96_v0 = vpop.xlane.xlu0 %95 }
  0x99   :  { %v460_v38 = vsel %vm84_vm0, %v435_v22, 0.0  ;;  %v360_v1 = vsel %vm84_vm0, %v335_v23, 0.0  ;;  %v238_v39 = vadd.f32 %v171_v31, %v96_v0  ;;  %v463_v55 = vsel %vm84_vm0, %v436_v2, 0.0 }
  0x9a   :  { %v2661_v46 = vsub.f32 %v2324_v9, %v262_v30  ;;  %v2664_v47 = vsub.f32 %v2319_v8, %v262_v30  ;;  %461 = vadd.xlane.f32.xlu1 %v460_v38  ;;  %361 = vadd.xlane.f32.xlu0 %v360_v1  ;;  %v363_v8 = vsel %vm84_vm0, %v336_v5, 0.0 }
  0x9b   :  { %v263_v54 = vmul.f32 0.0078125, %v238_v39 }
  0x9c   :  { %3676 = vst [vmem:[#allocation4_spill] sm:$0xff] %v2661_v46  ;;  %v174_v15 = vpop.xlane.xlu1 %173  ;;  %v99_v63 = vpop.xlane.xlu0 %98  ;;  %v437_v22 = vmul.f32 %v2664_v47, %v2664_v47  ;;  %v337_v23 = vmul.f32 %v2661_v46, %v2661_v46 }
  0x9d   :  { %v2672_v31 = vsub.f32 %v2338_v13, %v263_v54  ;;  %v2675_v9 = vsub.f32 %v2333_v12, %v263_v54  ;;  %v239_v30 = vadd.f32 %v174_v15, %v99_v63 }
  0x9e   :  { %464 = vadd.xlane.f32.xlu1 %v463_v55  ;;  %364 = vadd.xlane.f32.xlu0 %v363_v8  ;;  %v466_v0 = vsel %vm84_vm0, %v437_v22, 0.0  ;;  %v366_v38 = vsel %vm84_vm0, %v337_v23, 0.0 }
  0x9f   :  { %v264_v2 = vmul.f32 0.0078125, %v239_v30  ;;  %v438_v1 = vmul.f32 %v2675_v9, %v2675_v9  ;;  %v338_v13 = vmul.f32 %v2672_v31, %v2672_v31 }
  0xa0   :  { %v177_v39 = vpop.xlane.xlu1 %176  ;;  %v102_v46 = vpop.xlane.xlu0 %101 }
  0xa1   :  { %v2685_v12 = vsub.f32 %v2352_v17, %v264_v2  ;;  %v2688_v63 = vsub.f32 %v2347_v16, %v264_v2  ;;  %v240_v5 = vadd.f32 %v177_v39, %v102_v46  ;;  %v469_v54 = vsel %vm84_vm0, %v438_v1, 0.0 }
  0xa2   :  { %467 = vadd.xlane.f32.xlu1 %v466_v0  ;;  %367 = vadd.xlane.f32.xlu0 %v366_v38  ;;  %v369_v15 = vsel %vm84_vm0, %v338_v13, 0.0 }
  0xa3   :  { %v265_v55 = vmul.f32 0.0078125, %v240_v5  ;;  %v439_v22 = vmul.f32 %v2688_v63, %v2688_v63  ;;  %v339_v23 = vmul.f32 %v2685_v12, %v2685_v12 }
  0xa4   :  { %v180_v8 = vpop.xlane.xlu1 %179  ;;  %v105_v17 = vpop.xlane.xlu0 %104 }
  0xa5   :  { %v2697_v30 = vsub.f32 %v2366_v21, %v265_v55  ;;  %v2700_v16 = vsub.f32 %v2361_v20, %v265_v55  ;;  %v241_v46 = vadd.f32 %v180_v8, %v105_v17  ;;  %v472_v0 = vsel %vm84_vm0, %v439_v22, 0.0 }
  0xa6   :  { %470 = vadd.xlane.f32.xlu1 %v469_v54  ;;  %370 = vadd.xlane.f32.xlu0 %v369_v15  ;;  %v372_v38 = vsel %vm84_vm0, %v339_v23, 0.0 }
  0xa7   :  { %v266_v2 = vmul.f32 0.0078125, %v241_v46  ;;  %v440_v1 = vmul.f32 %v2700_v16, %v2700_v16  ;;  %v340_v13 = vmul.f32 %v2697_v30, %v2697_v30 }
  0xa8   :  { %v183_v39 = vpop.xlane.xlu1 %182  ;;  %v108_v21 = vpop.xlane.xlu0 %107 }
  0xa9   :  { %v2709_v5 = vsub.f32 %v2380_v25, %v266_v2  ;;  %v2712_v20 = vsub.f32 %v2375_v24, %v266_v2  ;;  %v242_v54 = vadd.f32 %v183_v39, %v108_v21  ;;  %v475_v55 = vsel %vm84_vm0, %v440_v1, 0.0 }
  0xaa   :  { %473 = vadd.xlane.f32.xlu1 %v472_v0  ;;  %373 = vadd.xlane.f32.xlu0 %v372_v38  ;;  %v375_v22 = vsel %vm84_vm0, %v340_v13, 0.0 }
  0xab   :  { %v267_v15 = vmul.f32 0.0078125, %v242_v54  ;;  %v441_v23 = vmul.f32 %v2712_v20, %v2712_v20  ;;  %v341_v8 = vmul.f32 %v2709_v5, %v2709_v5 }
  0xac   :  { %v186_v17 = vpop.xlane.xlu1 %185  ;;  %v111_v25 = vpop.xlane.xlu0 %110 }
  0xad   :  { %v2721_v46 = vsub.f32 %v2394_v29, %v267_v15  ;;  %v2724_v24 = vsub.f32 %v2389_v28, %v267_v15  ;;  %v243_v0 = vadd.f32 %v186_v17, %v111_v25  ;;  %v478_v2 = vsel %vm84_vm0, %v441_v23, 0.0  ;;  %v870_v23 = vld [vmem:[%s3655_s6 + $0x38] sm:$0xff] }
  0xae   :  { %476 = vadd.xlane.f32.xlu1 %v475_v55  ;;  %376 = vadd.xlane.f32.xlu0 %v375_v22  ;;  %v378_v1 = vsel %vm84_vm0, %v341_v8, 0.0  ;;  %v3666_v15 = vmov 0.0   ;;  %v878_v22 = vld [vmem:[%s3654_s7 + $0x38] sm:$0xff] }
  0xaf   :  { %v268_v38 = vmul.f32 0.0078125, %v243_v0  ;;  %v442_v13 = vmul.f32 %v2724_v24, %v2724_v24  ;;  %v342_v39 = vmul.f32 %v2721_v46, %v2721_v46  ;;  %1872 = vmatprep.subr.mxu0 %v3666_v15  ;;  %1963 = vmatprep.subr.mxu1 %v3666_v15  ;;  %v877_v0 = vld [vmem:[%s3654_s7 + $0x30] sm:$0xff] }
  0xb0   :  { %v189_v21 = vpop.xlane.xlu1 %188  ;;  %v114_v29 = vpop.xlane.xlu0 %113  ;;  %1873 = vmatpush3.msra.mxu0 %v878_v22  ;;  %1964 = vmatpush3.msra.mxu1 %v870_v23 }
  0xb1   :  { %v2733_v54 = vsub.f32 %v2408_v33, %v268_v38  ;;  %v2736_v28 = vsub.f32 %v2403_v32, %v268_v38  ;;  %v244_v55 = vadd.f32 %v189_v21, %v114_v29  ;;  %v481_v33 = vsel %vm84_vm0, %v442_v13, 0.0  ;;  %1874 = vmatprep.subr.mxu0 %v3666_v15  ;;  %1965 = vmatprep.subr.mxu1 %v3666_v15  ;;  %v876_v29 = vld [vmem:[%s3654_s7 + $0x28] sm:$0xff] }
  0xb2   :  { %479 = vadd.xlane.f32.xlu1 %v478_v2  ;;  %379 = vadd.xlane.f32.xlu0 %v378_v1  ;;  %v381_v8 = vsel %vm84_vm0, %v342_v39, 0.0  ;;  %v869_v2 = vld [vmem:[%s3655_s6 + $0x30] sm:$0xff] }
  0xb3   :  { %v269_v32 = vmul.f32 0.0078125, %v244_v55  ;;  %v443_v17 = vmul.f32 %v2736_v28, %v2736_v28  ;;  %v343_v25 = vmul.f32 %v2733_v54, %v2733_v54  ;;  %1875 = vmatpush3.msra.mxu0 %v877_v0  ;;  %1966 = vmatpush3.msra.mxu1 %v869_v2  ;;  %v868_v55 = vld [vmem:[%s3655_s6 + $0x28] sm:$0xff] }
  0xb4   :  { %v192_v38 = vpop.xlane.xlu1 %191  ;;  %v117_v1 = vpop.xlane.xlu0 %116  ;;  %1876 = vmatprep.subr.mxu0 %v3666_v15  ;;  %1967 = vmatprep.subr.mxu1 %v3666_v15 }
  0xb5   :  { %v2761_v13 = vsub.f32 %v2422_v37, %v269_v32  ;;  %v2764_v39 = vsub.f32 %v2417_v36, %v269_v32  ;;  %v245_v21 = vadd.f32 %v192_v38, %v117_v1  ;;  %v484_v22 = vsel %vm84_vm0, %v443_v17, 0.0  ;;  %1877 = vmatpush3.msra.mxu0 %v876_v29  ;;  %1968 = vmatpush3.msra.mxu1 %v868_v55 }
  0xb6   :  { %482 = vadd.xlane.f32.xlu1 %v481_v33  ;;  %382 = vadd.xlane.f32.xlu0 %v381_v8  ;;  %v384_v23 = vsel %vm84_vm0, %v343_v25, 0.0  ;;  %v875_v33 = vld [vmem:[%s3654_s7 + $0x20] sm:$0xff] }
  0xb7   :  { %v270_v37 = vmul.f32 0.0078125, %v245_v21  ;;  %v444_v36 = vmul.f32 %v2764_v39, %v2764_v39  ;;  %v344_v32 = vmul.f32 %v2761_v13, %v2761_v13  ;;  %v867_v8 = vld [vmem:[%s3655_s6 + $0x20] sm:$0xff]  ;;  %1878 = vmatprep.subr.mxu0 %v3666_v15  ;;  %1969 = vmatprep.subr.mxu1 %v3666_v15  ;;  %v874_v21 = vld [vmem:[%s3654_s7 + $0x18] sm:$0xff] }
  0xb8   :  { %v195_v0 = vpop.xlane.xlu1 %194  ;;  %v120_v2 = vpop.xlane.xlu0 %119  ;;  %1879 = vmatpush3.msra.mxu0 %v875_v33  ;;  %1970 = vmatpush3.msra.mxu1 %v867_v8  ;;  %v865_v33 = vld [vmem:[%s3655_s6 + $0x10] sm:$0xff] }
  0xb9   :  { %v2787_v17 = vsub.f32 %v2436_v41, %v270_v37  ;;  %v2790_v25 = vsub.f32 %v2431_v40, %v270_v37  ;;  %v246_v38 = vadd.f32 %v195_v0, %v120_v2  ;;  %v487_v1 = vsel %vm84_vm0, %v444_v36, 0.0  ;;  %v866_v41 = vld [vmem:[%s3655_s6 + $0x18] sm:$0xff]  ;;  %1880 = vmatprep.subr.mxu0 %v3666_v15  ;;  %1971 = vmatprep.subr.mxu1 %v3666_v15  ;;  %v873_v2 = vld [vmem:[%s3654_s7 + $0x10] sm:$0xff] }
  0xba   :  { %485 = vadd.xlane.f32.xlu1 %v484_v22  ;;  %385 = vadd.xlane.f32.xlu0 %v384_v23  ;;  %v387_v40 = vsel %vm84_vm0, %v344_v32, 0.0 }
  0xbb   :  { %v271_v29 = vmul.f32 0.0078125, %v246_v38  ;;  %v445_v55 = vmul.f32 %v2790_v25, %v2790_v25  ;;  %v345_v22 = vmul.f32 %v2787_v17, %v2787_v17  ;;  %1881 = vmatpush3.msra.mxu0 %v874_v21  ;;  %1972 = vmatpush3.msra.mxu1 %v866_v41 }
  0xbc   :  { %v198_v37 = vpop.xlane.xlu1 %197  ;;  %v123_v23 = vpop.xlane.xlu0 %122  ;;  %1882 = vmatprep.subr.mxu0 %v3666_v15  ;;  %1973 = vmatprep.subr.mxu1 %v3666_v15 }
  0xbd   :  { %v2809_v36 = vsub.f32 %v2450_v45, %v271_v29  ;;  %v2812_v0 = vsub.f32 %v2445_v44, %v271_v29  ;;  %v247_v32 = vadd.f32 %v198_v37, %v123_v23  ;;  %v490_v8 = vsel %vm84_vm0, %v445_v55, 0.0  ;;  %1883 = vmatpush3.msra.mxu0 %v873_v2  ;;  %1974 = vmatpush3.msra.mxu1 %v865_v33 }
  0xbe   :  { %488 = vadd.xlane.f32.xlu1 %v487_v1  ;;  %388 = vadd.xlane.f32.xlu0 %v387_v40  ;;  %v390_v38 = vsel %vm84_vm0, %v345_v22, 0.0  ;;  %v872_v1 = vld [vmem:[%s3654_s7 + $0x8] sm:$0xff] }
  0xbf   :  { %v272_v45 = vmul.f32 0.0078125, %v247_v32  ;;  %v446_v44 = vmul.f32 %v2812_v0, %v2812_v0  ;;  %v346_v21 = vmul.f32 %v2809_v36, %v2809_v36  ;;  %v864_v40 = vld [vmem:[%s3655_s6 + $0x8] sm:$0xff]  ;;  %1884 = vmatprep.subr.mxu0 %v3666_v15  ;;  %1975 = vmatprep.subr.mxu1 %v3666_v15  ;;  %v871_v32 = vld [vmem:[%s3654_s7] sm:$0xff] }
  0xc0   :  { %v201_v41 = vpop.xlane.xlu1 %200  ;;  %v126_v29 = vpop.xlane.xlu0 %125  ;;  %1885 = vmatpush3.msra.mxu0 %v872_v1  ;;  %1976 = vmatpush3.msra.mxu1 %v864_v40 }
  0xc1   :  { %v2835_v55 = vsub.f32 %v2464_v49, %v272_v45  ;;  %v2838_v22 = vsub.f32 %v2459_v48, %v272_v45  ;;  %v248_v37 = vadd.f32 %v201_v41, %v126_v29  ;;  %v493_v23 = vsel %vm84_vm0, %v446_v44, 0.0  ;;  %1886 = vmatprep.subr.mxu0 %v3666_v15  ;;  %1977 = vmatprep.subr.mxu1 %v3666_v15 }
  0xc2   :  { %491 = vadd.xlane.f32.xlu1 %v490_v8  ;;  %391 = vadd.xlane.f32.xlu0 %v390_v38  ;;  %v393_v49 = vsel %vm84_vm0, %v346_v21, 0.0  ;;  %v863_v38 = vld [vmem:[%s3655_s6] sm:$0xff] }
  0xc3   :  { %v273_v2 = vmul.f32 0.0078125, %v248_v37  ;;  %v447_v48 = vmul.f32 %v2838_v22, %v2838_v22  ;;  %v347_v33 = vmul.f32 %v2835_v55, %v2835_v55  ;;  %1887 = vmatpush3.msra.mxu0 %v871_v32  ;;  %1888 = vmatprep.mubr.msk.f32.mxu0 %vm2232_vm1, %v3666_v15 }
  0xc4   :  { %v204_v45 = vpop.xlane.xlu1 %203  ;;  %v129_v8 = vpop.xlane.xlu0 %128  ;;  %1978 = vmatpush3.msra.mxu1 %v863_v38  ;;  %1979 = vmatprep.mubr.msk.f32.mxu1 %vm2232_vm1, %v3666_v15 }
  0xc5   :  { %v2857_v44 = vsub.f32 %v2478_v53, %v273_v2  ;;  %v2860_v21 = vsub.f32 %v2473_v52, %v273_v2  ;;  %v249_v41 = vadd.f32 %v204_v45, %v129_v8  ;;  %v496_v29 = vsel %vm84_vm0, %v447_v48, 0.0 }
  0xc6   :  { %494 = vadd.xlane.f32.xlu1 %v493_v23  ;;  %394 = vadd.xlane.f32.xlu0 %v393_v49  ;;  %v396_v40 = vsel %vm84_vm0, %v347_v33, 0.0 }
  0xc7   :  { %v274_v1 = vmul.f32 0.0078125, %v249_v41  ;;  %v448_v53 = vmul.f32 %v2860_v21, %v2860_v21  ;;  %v348_v52 = vmul.f32 %v2857_v44, %v2857_v44 }
  0xc8   :  { %v207_v37 = vpop.xlane.xlu1 %206  ;;  %v132_v32 = vpop.xlane.xlu0 %131 }
  0xc9   :  { %v2873_v23 = vsub.f32 %v2492_v57, %v274_v1  ;;  %v2876_v2 = vsub.f32 %v2487_v56, %v274_v1  ;;  %v250_v49 = vadd.f32 %v207_v37, %v132_v32  ;;  %v499_v48 = vsel %vm84_vm0, %v448_v53, 0.0 }
  0xca   :  { %497 = vadd.xlane.f32.xlu1 %v496_v29  ;;  %397 = vadd.xlane.f32.xlu0 %v396_v40  ;;  %v399_v45 = vsel %vm84_vm0, %v348_v52, 0.0 }
  0xcb   :  { %v275_v33 = vmul.f32 0.0078125, %v250_v49  ;;  %v449_v8 = vmul.f32 %v2876_v2, %v2876_v2  ;;  %v349_v38 = vmul.f32 %v2873_v23, %v2873_v23 }
  0xcc   :  { %v210_v41 = vpop.xlane.xlu1 %209  ;;  %v135_v57 = vpop.xlane.xlu0 %134 }
  0xcd   :  { %v2885_v15 = vsub.f32 %v2506_v61, %v275_v33  ;;  %v2888_v56 = vsub.f32 %v2501_v60, %v275_v33  ;;  %v251_v29 = vadd.f32 %v210_v41, %v135_v57  ;;  %v502_v1 = vsel %vm84_vm0, %v449_v8, 0.0 }
  0xce   :  { %500 = vadd.xlane.f32.xlu1 %v499_v48  ;;  %400 = vadd.xlane.f32.xlu0 %v399_v45  ;;  %v402_v53 = vsel %vm84_vm0, %v349_v38, 0.0 }
  0xcf   :  { %v276_v40 = vmul.f32 0.0078125, %v251_v29  ;;  %v450_v52 = vmul.f32 %v2888_v56, %v2888_v56  ;;  %v350_v37 = vmul.f32 %v2885_v15, %v2885_v15 }
  0xd0   :  { %v213_v32 = vpop.xlane.xlu1 %212  ;;  %v138_v61 = vpop.xlane.xlu0 %137 }
  0xd1   :  { %v2897_v49 = vsub.f32 %v2520_v4, %v276_v40  ;;  %v2900_v60 = vsub.f32 %v2515_v3, %v276_v40  ;;  %v252_v48 = vadd.f32 %v213_v32, %v138_v61  ;;  %v505_v33 = vsel %vm84_vm0, %v450_v52, 0.0 }
  0xd2   :  { %503 = vadd.xlane.f32.xlu1 %v502_v1  ;;  %403 = vadd.xlane.f32.xlu0 %v402_v53  ;;  %v405_v8 = vsel %vm84_vm0, %v350_v37, 0.0 }
  0xd3   :  { %v277_v45 = vmul.f32 0.0078125, %v252_v48  ;;  %v451_v38 = vmul.f32 %v2900_v60, %v2900_v60  ;;  %v351_v41 = vmul.f32 %v2897_v49, %v2897_v49 }
  0xd4   :  { %v216_v57 = vpop.xlane.xlu1 %215  ;;  %v141_v4 = vpop.xlane.xlu0 %140 }
  0xd5   :  { %v2909_v29 = vsub.f32 %v2534_v11, %v277_v45  ;;  %v2912_v3 = vsub.f32 %v2529_v10, %v277_v45  ;;  %v253_v1 = vadd.f32 %v216_v57, %v141_v4  ;;  %v508_v40 = vsel %vm84_vm0, %v451_v38, 0.0 }
  0xd6   :  { %506 = vadd.xlane.f32.xlu1 %v505_v33  ;;  %406 = vadd.xlane.f32.xlu0 %v405_v8  ;;  %v408_v52 = vsel %vm84_vm0, %v351_v41, 0.0 }
  0xd7   :  { %v278_v53 = vmul.f32 0.0078125, %v253_v1  ;;  %v452_v37 = vmul.f32 %v2912_v3, %v2912_v3  ;;  %v352_v32 = vmul.f32 %v2909_v29, %v2909_v29 }
  0xd8   :  { %v219_v61 = vpop.xlane.xlu1 %218  ;;  %v144_v11 = vpop.xlane.xlu0 %143 }
  0xd9   :  { %v2921_v48 = vsub.f32 %v2548_v19, %v278_v53  ;;  %v2924_v10 = vsub.f32 %v2543_v18, %v278_v53  ;;  %v254_v33 = vadd.f32 %v219_v61, %v144_v11  ;;  %v511_v45 = vsel %vm84_vm0, %v452_v37, 0.0 }
  0xda   :  { %509 = vadd.xlane.f32.xlu1 %v508_v40  ;;  %409 = vadd.xlane.f32.xlu0 %v408_v52  ;;  %v411_v38 = vsel %vm84_vm0, %v352_v32, 0.0 }
  0xdb   :  { %v279_v8 = vmul.f32 0.0078125, %v254_v33  ;;  %v453_v41 = vmul.f32 %v2924_v10, %v2924_v10  ;;  %v353_v57 = vmul.f32 %v2921_v48, %v2921_v48 }
  0xdc   :  { %v222_v4 = vpop.xlane.xlu1 %221  ;;  %v147_v19 = vpop.xlane.xlu0 %146 }
  0xdd   :  { %v2933_v1 = vsub.f32 %v2562_v27, %v279_v8  ;;  %v2936_v18 = vsub.f32 %v2557_v26, %v279_v8  ;;  %v255_v40 = vadd.f32 %v222_v4, %v147_v19  ;;  %v514_v53 = vsel %vm84_vm0, %v453_v41, 0.0 }
  0xde   :  { %512 = vadd.xlane.f32.xlu1 %v511_v45  ;;  %412 = vadd.xlane.f32.xlu0 %v411_v38  ;;  %v414_v37 = vsel %vm84_vm0, %v353_v57, 0.0 }
  0xdf   :  { %v280_v52 = vmul.f32 0.0078125, %v255_v40  ;;  %v454_v32 = vmul.f32 %v2936_v18, %v2936_v18  ;;  %v354_v61 = vmul.f32 %v2933_v1, %v2933_v1 }
  0xe0   :  { %v225_v11 = vpop.xlane.xlu1 %224  ;;  %v150_v27 = vpop.xlane.xlu0 %149 }
  0xe1   :  { %v2945_v33 = vsub.f32 %v2576_v35, %v280_v52  ;;  %v2948_v26 = vsub.f32 %v2571_v34, %v280_v52  ;;  %v256_v45 = vadd.f32 %v225_v11, %v150_v27  ;;  %v517_v8 = vsel %vm84_vm0, %v454_v32, 0.0 }
  0xe2   :  { %515 = vadd.xlane.f32.xlu1 %v514_v53  ;;  %415 = vadd.xlane.f32.xlu0 %v414_v37  ;;  %v417_v41 = vsel %vm84_vm0, %v354_v61, 0.0 }
  0xe3   :  { %v281_v38 = vmul.f32 0.0078125, %v256_v45  ;;  %v455_v57 = vmul.f32 %v2948_v26, %v2948_v26  ;;  %v355_v4 = vmul.f32 %v2945_v33, %v2945_v33 }
  0xe4   :  { %v228_v19 = vpop.xlane.xlu1 %227  ;;  %v153_v35 = vpop.xlane.xlu0 %152 }
  0xe5   :  { %v2957_v40 = vsub.f32 %v2590_v43, %v281_v38  ;;  %v2960_v34 = vsub.f32 %v2585_v42, %v281_v38  ;;  %v257_v53 = vadd.f32 %v228_v19, %v153_v35  ;;  %v520_v52 = vsel %vm84_vm0, %v455_v57, 0.0 }
  0xe6   :  { %518 = vadd.xlane.f32.xlu1 %v517_v8  ;;  %418 = vadd.xlane.f32.xlu0 %v417_v41  ;;  %v420_v32 = vsel %vm84_vm0, %v355_v4, 0.0 }
  0xe7   :  { %v282_v37 = vmul.f32 0.0078125, %v257_v53  ;;  %v456_v61 = vmul.f32 %v2960_v34, %v2960_v34  ;;  %v356_v11 = vmul.f32 %v2957_v40, %v2957_v40 }
  0xe8   :  { %v231_v27 = vpop.xlane.xlu1 %230  ;;  %v156_v43 = vpop.xlane.xlu0 %155 }
  0xe9   :  { %v2969_v45 = vsub.f32 %v2604_v51, %v282_v37  ;;  %v2972_v42 = vsub.f32 %v2599_v50, %v282_v37  ;;  %v258_v8 = vadd.f32 %v231_v27, %v156_v43  ;;  %v523_v38 = vsel %vm84_vm0, %v456_v61, 0.0  ;;  %v3682_v43 = vld [vmem:[#allocation2_spill] sm:$0xff] }
  0xea   :  { %521 = vadd.xlane.f32.xlu1 %v520_v52  ;;  %421 = vadd.xlane.f32.xlu0 %v420_v32  ;;  %v423_v57 = vsel %vm84_vm0, %v356_v11, 0.0 }
  0xeb   :  { %3677 = vst [vmem:[#allocation5_spill] sm:$0xff] %v2969_v45  ;;  %3678 = vst [vmem:[#allocation6_spill] sm:$0xff] %v2972_v42  ;;  %v283_v41 = vmul.f32 0.0078125, %v258_v8  ;;  %v457_v4 = vmul.f32 %v2972_v42, %v2972_v42  ;;  %v357_v19 = vmul.f32 %v2969_v45, %v2969_v45 }
  0xec   :  { %v234_v35 = vpop.xlane.xlu1 %233  ;;  %v159_v51 = vpop.xlane.xlu0 %158 }
  0xed   :  { %v2981_v53 = vsub.f32 %v2618_v59, %v283_v41  ;;  %v2984_v50 = vsub.f32 %v2613_v58, %v283_v41  ;;  %v259_v52 = vadd.f32 %v234_v35, %v159_v51  ;;  %v526_v37 = vsel %vm84_vm0, %v457_v4, 0.0 }
  0xee   :  { %524 = vadd.xlane.f32.xlu1 %v523_v38  ;;  %424 = vadd.xlane.f32.xlu0 %v423_v57  ;;  %v426_v61 = vsel %vm84_vm0, %v357_v19, 0.0 }
  0xef   :  { %3679 = vst [vmem:[#allocation7_spill] sm:$0xff] %v2981_v53  ;;  %3680 = vst [vmem:[#allocation8_spill] sm:$0xff] %v2984_v50  ;;  %v284_v32 = vmul.f32 0.0078125, %v259_v52  ;;  %v458_v11 = vmul.f32 %v2984_v50, %v2984_v50  ;;  %v358_v27 = vmul.f32 %v2981_v53, %v2981_v53 }
  0xf1   :  { %v2993_v59 = vsub.f32 %v2632_v7, %v284_v32  ;;  %v2996_v58 = vsub.f32 %v3682_v43, %v284_v32  ;;  %v529_v8 = vsel %vm84_vm0, %v458_v11, 0.0  ;;  %v429_v38 = vsel %vm84_vm0, %v358_v27, 0.0 }
  0xf2   :  { %527 = vadd.xlane.f32.xlu1 %v526_v37  ;;  %427 = vadd.xlane.f32.xlu0 %v426_v61 }
  0xf3   :  { %3681 = vst [vmem:[#allocation9_spill] sm:$0xff] %v2993_v59  ;;  %3683 = vst [vmem:[#allocation2_spill] sm:$0xff] %v2996_v58  ;;  %v459_v41 = vmul.f32 %v2996_v58, %v2996_v58  ;;  %v359_v57 = vmul.f32 %v2993_v59, %v2993_v59 }
  0xf5   :  { %v532_v7 = vsel %vm84_vm0, %v459_v41, 0.0  ;;  %v432_v4 = vsel %vm84_vm0, %v359_v57, 0.0 }
  0xf6   :  { %530 = vadd.xlane.f32.xlu1 %v529_v8  ;;  %430 = vadd.xlane.f32.xlu0 %v429_v38 }
  0xfa   :  { %533 = vadd.xlane.f32.xlu1 %v532_v7  ;;  %433 = vadd.xlane.f32.xlu0 %v432_v4 }
 0x123   :  { %v462_v19 = vpop.xlane.xlu1 %461  ;;  %v362_v35 = vpop.xlane.xlu0 %361 }
 0x124   :  { %v535_v51 = vadd.f32 %v462_v19, %v362_v35 }
 0x126   :  { %v560_v52 = vmul.f32 0.0078125, %v535_v51 }
 0x127   :  { %v465_v37 = vpop.xlane.xlu1 %464  ;;  %v365_v32 = vpop.xlane.xlu0 %364 }
 0x128   :  { %v585_v61 = vadd.f32 1e-05, %v560_v52  ;;  %v536_v11 = vadd.f32 %v465_v37, %v365_v32 }
 0x12a   :  { %2056 = vrsqrt.f32 %v585_v61  ;;  %v561_v27 = vmul.f32 0.0078125, %v536_v11 }
 0x12b   :  { %v468_v43 = vpop.xlane.xlu1 %467  ;;  %v368_v59 = vpop.xlane.xlu0 %367 }
 0x12c   :  { %v586_v8 = vadd.f32 1e-05, %v561_v27  ;;  %v537_v38 = vadd.f32 %v468_v43, %v368_v59  ;;  %v3009_v59 = vld [vmem:[%s3656_s3] ss:$0 sm:$0xff] }
 0x12e   :  { %2058 = vrsqrt.f32 %v586_v8  ;;  %v562_v41 = vmul.f32 0.0078125, %v537_v38  ;;  %v3026_v8 = vld [vmem:[%s3659_s4] ss:$0 sm:$0xff] }
 0x12f   :  { %v471_v58 = vpop.xlane.xlu1 %470  ;;  %v371_v57 = vpop.xlane.xlu0 %370 }
 0x130   :  { %v587_v7 = vadd.f32 1e-05, %v562_v41  ;;  %v538_v4 = vadd.f32 %v471_v58, %v371_v57  ;;  %v3014_v58 = vld [vmem:[%s3657_s2] ss:$0 sm:$0xff] }
 0x132   :  { %2060 = vrsqrt.f32 %v587_v7  ;;  %v563_v53 = vmul.f32 0.0078125, %v538_v4 }
 0x133   :  { %v474_v19 = vpop.xlane.xlu1 %473  ;;  %v374_v35 = vpop.xlane.xlu0 %373 }
 0x134   :  { %v588_v51 = vadd.f32 1e-05, %v563_v53  ;;  %v539_v50 = vadd.f32 %v474_v19, %v374_v35 }
 0x136   :  { %2062 = vrsqrt.f32 %v588_v51  ;;  %v564_v52 = vmul.f32 0.0078125, %v539_v50  ;;  %v3021_v50 = vld [vmem:[%s3658_s5] ss:$0 sm:$0xff] }
 0x137   :  { %v2057_v37 = vpop.eup %2056  ;;  %v477_v32 = vpop.xlane.xlu1 %476 }
 0x138   :  { %v377_v61 = vpop.xlane.xlu0 %376  ;;  %v589_v11 = vadd.f32 1e-05, %v564_v52  ;;  %v749_v53 = vmul.f32 %v2057_v37, %v2648_v14  ;;  %v635_v43 = vmul.f32 %v2057_v37, %v2645_v6  ;;  %v3684_v52 = vld [vmem:[#allocation3_spill] sm:$0xff] }
 0x139   :  { %v540_v27 = vadd.f32 %v477_v32, %v377_v61 }
 0x13a   :  { %2064 = vrsqrt.f32 %v589_v11  ;;  %v781_v41 = vmul.f32 %v3009_v59, %v749_v53  ;;  %v667_v57 = vmul.f32 %v3014_v58, %v635_v43 }
 0x13b   :  { %v565_v38 = vmul.f32 0.0078125, %v540_v27  ;;  %v2059_v7 = vpop.eup %2058  ;;  %v480_v14 = vpop.xlane.xlu1 %479 }
 0x13c   :  { %v380_v4 = vpop.xlane.xlu0 %379  ;;  %v813_v35 = vadd.f32 %v3021_v50, %v781_v41  ;;  %v699_v51 = vadd.f32 %v3026_v8, %v667_v57  ;;  %v750_v37 = vmul.f32 %v2059_v7, %v3684_v52  ;;  %v636_v32 = vmul.f32 %v2059_v7, %v2639_v62  ;;  %v3685_v62 = vld [vmem:[#allocation4_spill] sm:$0xff] }
 0x13d   :  { %v590_v6 = vadd.f32 1e-05, %v565_v38  ;;  %v541_v19 = vadd.f32 %v480_v14, %v380_v4  ;;  %v3686_v7 = vmov 0.0  }
 0x13e   :  { %v838_v11 = vmax.f32 %v813_v35, 0.0  ;;  %v724_v27 = vmax.f32 %v699_v51, 0.0  ;;  %v782_v42 = vmul.f32 %v3009_v59, %v750_v37  ;;  %v668_v38 = vmul.f32 %v3014_v58, %v636_v32 }
 0x13f   :  { %2066 = vrsqrt.f32 %v590_v6  ;;  %v566_v61 = vmul.f32 0.0078125, %v541_v19  ;;  %v2061_v53 = vpop.eup %2060  ;;  %v483_v45 = vpop.xlane.xlu1 %482 }
 0x140   :  { %v383_v43 = vpop.xlane.xlu0 %382  ;;  %1889 = vmatmul.mubr.msk.f32.vlgmr.msra.gmra.mxu0 %vm84_vm0, %v838_v11  ;;  %1980 = vmatmul.mubr.msk.f32.vlgmr.msra.gmra.mxu1 %vm84_vm0, %v724_v27  ;;  %v751_v41 = vmul.f32 %v2061_v53, %v2664_v47  ;;  %v637_v57 = vmul.f32 %v2061_v53, %v3685_v62  ;;  %v814_v6 = vadd.f32 %v3021_v50, %v782_v42 }
 0x141   :  { %v591_v14 = vadd.f32 1e-05, %v566_v61  ;;  %v542_v4 = vadd.f32 %v483_v45, %v383_v43  ;;  %1891 = vmatprep.mubr.msk.f32.mxu0 %vm2232_vm1, %v3686_v7  ;;  %1982 = vmatprep.mubr.msk.f32.mxu1 %vm2232_vm1, %v3686_v7  ;;  %v700_v19 = vadd.f32 %v3026_v8, %v668_v38 }
 0x142   :  { %v783_v35 = vmul.f32 %v3009_v59, %v751_v41  ;;  %v669_v51 = vmul.f32 %v3014_v58, %v637_v57  ;;  %v839_v32 = vmax.f32 %v814_v6, 0.0 }
 0x143   :  { %2068 = vrsqrt.f32 %v591_v14  ;;  %v567_v45 = vmul.f32 0.0078125, %v542_v4  ;;  %v2063_v52 = vpop.eup %2062  ;;  %v486_v47 = vpop.xlane.xlu1 %485  ;;  %v725_v61 = vmax.f32 %v700_v19, 0.0 }
 0x144   :  { %v386_v37 = vpop.xlane.xlu0 %385  ;;  %v815_v53 = vadd.f32 %v3021_v50, %v783_v35  ;;  %v701_v43 = vadd.f32 %v3026_v8, %v669_v51  ;;  %1892 = vmatmul.mubr.msk.f32.gmra.mxu0 %vm84_vm0, %v839_v32  ;;  %v752_v42 = vmul.f32 %v2063_v52, %v2675_v9  ;;  %v638_v38 = vmul.f32 %v2063_v52, %v2672_v31 }
 0x145   :  { %v592_v11 = vadd.f32 1e-05, %v567_v45  ;;  %v543_v27 = vadd.f32 %v486_v47, %v386_v37  ;;  %1983 = vmatmul.mubr.msk.f32.gmra.mxu1 %vm84_vm0, %v725_v61  ;;  %1894 = vmatprep.mubr.msk.f32.mxu0 %vm2232_vm1, %v3686_v7 }
 0x146   :  { %1985 = vmatprep.mubr.msk.f32.mxu1 %vm2232_vm1, %v3686_v7  ;;  %v840_v4 = vmax.f32 %v815_v53, 0.0  ;;  %v726_v41 = vmax.f32 %v701_v43, 0.0  ;;  %v784_v19 = vmul.f32 %v3009_v59, %v752_v42  ;;  %v670_v45 = vmul.f32 %v3014_v58, %v638_v38 }
 0x147   :  { %2070 = vrsqrt.f32 %v592_v11  ;;  %v568_v14 = vmul.f32 0.0078125, %v543_v27  ;;  %v2065_v62 = vpop.eup %2064  ;;  %v489_v57 = vpop.xlane.xlu1 %488 }
 0x148   :  { %v389_v6 = vpop.xlane.xlu0 %388  ;;  %v753_v31 = vmul.f32 %v2065_v62, %v2688_v63  ;;  %v639_v51 = vmul.f32 %v2065_v62, %v2685_v12  ;;  %1895 = vmatmul.mubr.msk.f32.gmra.mxu0 %vm84_vm0, %v840_v4  ;;  %v816_v52 = vadd.f32 %v3021_v50, %v784_v19  ;;  %v702_v47 = vadd.f32 %v3026_v8, %v670_v45 }
 0x149   :  { %v593_v9 = vadd.f32 1e-05, %v568_v14  ;;  %v544_v35 = vadd.f32 %v489_v57, %v389_v6  ;;  %1986 = vmatmul.mubr.msk.f32.gmra.mxu1 %vm84_vm0, %v726_v41  ;;  %1897 = vmatprep.mubr.msk.f32.mxu0 %vm2232_vm1, %v3686_v7 }
 0x14a   :  { %1988 = vmatprep.mubr.msk.f32.mxu1 %vm2232_vm1, %v3686_v7  ;;  %v785_v63 = vmul.f32 %v3009_v59, %v753_v31  ;;  %v671_v12 = vmul.f32 %v3014_v58, %v639_v51  ;;  %v841_v27 = vmax.f32 %v816_v52, 0.0  ;;  %v727_v53 = vmax.f32 %v702_v47, 0.0 }
 0x14b   :  { %2072 = vrsqrt.f32 %v593_v9  ;;  %v569_v37 = vmul.f32 0.0078125, %v544_v35  ;;  %v492_v61 = vpop.xlane.xlu1 %491 }
 0x14c   :  { %v2067_v32 = vpop.eup %2066  ;;  %v392_v11 = vpop.xlane.xlu0 %391  ;;  %v817_v38 = vadd.f32 %v3021_v50, %v785_v63  ;;  %v703_v14 = vadd.f32 %v3026_v8, %v671_v12  ;;  %1898 = vmatmul.mubr.msk.f32.gmra.mxu0 %vm84_vm0, %v841_v27 }
 0x14d   :  { %v594_v43 = vadd.f32 1e-05, %v569_v37  ;;  %v545_v42 = vadd.f32 %v492_v61, %v392_v11  ;;  %1989 = vmatmul.mubr.msk.f32.gmra.mxu1 %vm84_vm0, %v727_v53  ;;  %v754_v4 = vmul.f32 %v2067_v32, %v2700_v16  ;;  %v640_v41 = vmul.f32 %v2067_v32, %v2697_v30  ;;  %1900 = vmatprep.mubr.msk.f32.mxu0 %vm2232_vm1, %v3686_v7 }
 0x14e   :  { %1991 = vmatprep.mubr.msk.f32.mxu1 %vm2232_vm1, %v3686_v7  ;;  %v842_v57 = vmax.f32 %v817_v38, 0.0  ;;  %v728_v6 = vmax.f32 %v703_v14, 0.0 }
 0x14f   :  { %2074 = vrsqrt.f32 %v594_v43  ;;  %v570_v62 = vmul.f32 0.0078125, %v545_v42  ;;  %v495_v45 = vpop.xlane.xlu1 %494  ;;  %v786_v35 = vmul.f32 %v3009_v59, %v754_v4  ;;  %v672_v31 = vmul.f32 %v3014_v58, %v640_v41 }
 0x150   :  { %v2069_v19 = vpop.eup %2068  ;;  %v395_v9 = vpop.xlane.xlu0 %394  ;;  %1901 = vmatmul.mubr.msk.f32.gmra.mxu0 %vm84_vm0, %v842_v57 }
 0x151   :  { %v595_v16 = vadd.f32 1e-05, %v570_v62  ;;  %v546_v51 = vadd.f32 %v495_v45, %v395_v9  ;;  %v755_v30 = vmul.f32 %v2069_v19, %v2712_v20  ;;  %v641_v52 = vmul.f32 %v2069_v19, %v2709_v5  ;;  %1992 = vmatmul.mubr.msk.f32.gmra.mxu1 %vm84_vm0, %v728_v6  ;;  %1903 = vmatprep.mubr.msk.f32.mxu0 %vm2232_vm1, %v3686_v7 }
 0x152   :  { %v818_v47 = vadd.f32 %v3021_v50, %v786_v35  ;;  %v704_v37 = vadd.f32 %v3026_v8, %v672_v31  ;;  %1994 = vmatprep.mubr.msk.f32.mxu1 %vm2232_vm1, %v3686_v7 }
 0x153   :  { %2076 = vrsqrt.f32 %v595_v16  ;;  %v571_v63 = vmul.f32 0.0078125, %v546_v51  ;;  %v787_v20 = vmul.f32 %v3009_v59, %v755_v30  ;;  %v673_v5 = vmul.f32 %v3014_v58, %v641_v52  ;;  %v498_v32 = vpop.xlane.xlu1 %497 }
 0x154   :  { %v2071_v12 = vpop.eup %2070  ;;  %v398_v61 = vpop.xlane.xlu0 %397  ;;  %v843_v11 = vmax.f32 %v818_v47, 0.0  ;;  %v729_v27 = vmax.f32 %v704_v37, 0.0 }
 0x155   :  { %v596_v53 = vadd.f32 1e-05, %v571_v63  ;;  %v547_v43 = vadd.f32 %v498_v32, %v398_v61  ;;  %v819_v42 = vadd.f32 %v3021_v50, %v787_v20  ;;  %v705_v38 = vadd.f32 %v3026_v8, %v673_v5 }
 0x156   :  { %1904 = vmatmul.mubr.msk.f32.gmra.mxu0 %vm84_vm0, %v843_v11  ;;  %1995 = vmatmul.mubr.msk.f32.gmra.mxu1 %vm84_vm0, %v729_v27  ;;  %v756_v14 = vmul.f32 %v2071_v12, %v2724_v24  ;;  %v642_v4 = vmul.f32 %v2071_v12, %v2721_v46 }
 0x157   :  { %2078 = vrsqrt.f32 %v596_v53  ;;  %v572_v41 = vmul.f32 0.0078125, %v547_v43  ;;  %1906 = vmatprep.mubr.msk.f32.mxu0 %vm2232_vm1, %v3686_v7  ;;  %1997 = vmatprep.mubr.msk.f32.mxu1 %vm2232_vm1, %v3686_v7  ;;  %v844_v62 = vmax.f32 %v819_v42, 0.0  ;;  %v730_v57 = vmax.f32 %v705_v38, 0.0  ;;  %v501_v19 = vpop.xlane.xlu1 %500 }
 0x158   :  { %v2073_v6 = vpop.eup %2072  ;;  %v401_v45 = vpop.xlane.xlu0 %400  ;;  %v788_v9 = vmul.f32 %v3009_v59, %v756_v14  ;;  %v674_v35 = vmul.f32 %v3014_v58, %v642_v4 }
 0x159   :  { %v597_v24 = vadd.f32 1e-05, %v572_v41  ;;  %v548_v31 = vadd.f32 %v501_v19, %v401_v45  ;;  %v757_v46 = vmul.f32 %v2073_v6, %v2736_v28  ;;  %v643_v16 = vmul.f32 %v2073_v6, %v2733_v54 }
 0x15a   :  { %1907 = vmatmul.mubr.msk.f32.gmra.mxu0 %vm84_vm0, %v844_v62  ;;  %1998 = vmatmul.mubr.msk.f32.gmra.mxu1 %vm84_vm0, %v730_v57  ;;  %v820_v51 = vadd.f32 %v3021_v50, %v788_v9  ;;  %v706_v30 = vadd.f32 %v3026_v8, %v674_v35 }
 0x15b   :  { %2080 = vrsqrt.f32 %v597_v24  ;;  %v573_v52 = vmul.f32 0.0078125, %v548_v31  ;;  %1909 = vmatprep.mubr.msk.f32.mxu0 %vm2232_vm1, %v3686_v7  ;;  %2000 = vmatprep.mubr.msk.f32.mxu1 %vm2232_vm1, %v3686_v7  ;;  %v789_v28 = vmul.f32 %v3009_v59, %v757_v46  ;;  %v675_v54 = vmul.f32 %v3014_v58, %v643_v16  ;;  %v504_v37 = vpop.xlane.xlu1 %503 }
 0x15c   :  { %v2075_v47 = vpop.eup %2074  ;;  %v404_v63 = vpop.xlane.xlu0 %403  ;;  %v845_v20 = vmax.f32 %v820_v51, 0.0  ;;  %v731_v5 = vmax.f32 %v706_v30, 0.0 }
 0x15d   :  { %v598_v12 = vadd.f32 1e-05, %v573_v52  ;;  %v549_v32 = vadd.f32 %v504_v37, %v404_v63  ;;  %v821_v61 = vadd.f32 %v3021_v50, %v789_v28  ;;  %v707_v11 = vadd.f32 %v3026_v8, %v675_v54 }
 0x15e   :  { %1910 = vmatmul.mubr.msk.f32.gmra.mxu0 %vm84_vm0, %v845_v20  ;;  %2001 = vmatmul.mubr.msk.f32.gmra.mxu1 %vm84_vm0, %v731_v5  ;;  %v758_v27 = vmul.f32 %v2075_v47, %v2764_v39  ;;  %v644_v53 = vmul.f32 %v2075_v47, %v2761_v13 }
 0x15f   :  { %2082 = vrsqrt.f32 %v598_v12  ;;  %v574_v43 = vmul.f32 0.0078125, %v549_v32  ;;  %1912 = vmatprep.mubr.msk.f32.mxu0 %vm2232_vm1, %v3686_v7  ;;  %2003 = vmatprep.mubr.msk.f32.mxu1 %vm2232_vm1, %v3686_v7  ;;  %v846_v42 = vmax.f32 %v821_v61, 0.0  ;;  %v732_v38 = vmax.f32 %v707_v11, 0.0  ;;  %v507_v4 = vpop.xlane.xlu1 %506 }
 0x160   :  { %v2077_v14 = vpop.eup %2076  ;;  %v407_v41 = vpop.xlane.xlu0 %406  ;;  %v790_v62 = vmul.f32 %v3009_v59, %v758_v27  ;;  %v676_v57 = vmul.f32 %v3014_v58, %v644_v53 }
 0x161   :  { %v599_v39 = vadd.f32 1e-05, %v574_v43  ;;  %v550_v6 = vadd.f32 %v507_v4, %v407_v41  ;;  %v759_v13 = vmul.f32 %v2077_v14, %v2790_v25  ;;  %v645_v19 = vmul.f32 %v2077_v14, %v2787_v17 }
 0x162   :  { %1913 = vmatmul.mubr.msk.f32.gmra.mxu0 %vm84_vm0, %v846_v42  ;;  %2004 = vmatmul.mubr.msk.f32.gmra.mxu1 %vm84_vm0, %v732_v38  ;;  %v822_v45 = vadd.f32 %v3021_v50, %v790_v62  ;;  %v708_v9 = vadd.f32 %v3026_v8, %v676_v57 }
 0x163   :  { %2084 = vrsqrt.f32 %v599_v39  ;;  %v575_v35 = vmul.f32 0.0078125, %v550_v6  ;;  %1915 = vmatprep.mubr.msk.f32.mxu0 %vm2232_vm1, %v3686_v7  ;;  %2006 = vmatprep.mubr.msk.f32.mxu1 %vm2232_vm1, %v3686_v7  ;;  %v791_v25 = vmul.f32 %v3009_v59, %v759_v13  ;;  %v677_v17 = vmul.f32 %v3014_v58, %v645_v19  ;;  %v510_v31 = vpop.xlane.xlu1 %509 }
 0x164   :  { %v2079_v24 = vpop.eup %2078  ;;  %v410_v46 = vpop.xlane.xlu0 %409  ;;  %v847_v16 = vmax.f32 %v822_v45, 0.0  ;;  %v733_v51 = vmax.f32 %v708_v9, 0.0 }
 0x165   :  { %v600_v30 = vadd.f32 1e-05, %v575_v35  ;;  %v551_v52 = vadd.f32 %v510_v31, %v410_v46  ;;  %v823_v28 = vadd.f32 %v3021_v50, %v791_v25  ;;  %v709_v54 = vadd.f32 %v3026_v8, %v677_v17 }
 0x166   :  { %1916 = vmatmul.mubr.msk.f32.gmra.mxu0 %vm84_vm0, %v847_v16  ;;  %2007 = vmatmul.mubr.msk.f32.gmra.mxu1 %vm84_vm0, %v733_v51  ;;  %v760_v47 = vmul.f32 %v2079_v24, %v2812_v0  ;;  %v646_v37 = vmul.f32 %v2079_v24, %v2809_v36 }
 0x167   :  { %2086 = vrsqrt.f32 %v600_v30  ;;  %v576_v63 = vmul.f32 0.0078125, %v551_v52  ;;  %1918 = vmatprep.mubr.msk.f32.mxu0 %vm2232_vm1, %v3686_v7  ;;  %2009 = vmatprep.mubr.msk.f32.mxu1 %vm2232_vm1, %v3686_v7  ;;  %v848_v20 = vmax.f32 %v823_v28, 0.0  ;;  %v734_v5 = vmax.f32 %v709_v54, 0.0  ;;  %v513_v32 = vpop.xlane.xlu1 %512 }
 0x168   :  { %v2081_v12 = vpop.eup %2080  ;;  %v413_v61 = vpop.xlane.xlu0 %412  ;;  %v792_v11 = vmul.f32 %v3009_v59, %v760_v47  ;;  %v678_v27 = vmul.f32 %v3014_v58, %v646_v37 }
 0x169   :  { %v601_v0 = vadd.f32 1e-05, %v576_v63  ;;  %v552_v53 = vadd.f32 %v513_v32, %v413_v61  ;;  %v761_v36 = vmul.f32 %v2081_v12, %v2838_v22  ;;  %v647_v43 = vmul.f32 %v2081_v12, %v2835_v55 }
 0x16a   :  { %1919 = vmatmul.mubr.msk.f32.gmra.mxu0 %vm84_vm0, %v848_v20  ;;  %2010 = vmatmul.mubr.msk.f32.gmra.mxu1 %vm84_vm0, %v734_v5  ;;  %v824_v42 = vadd.f32 %v3021_v50, %v792_v11  ;;  %v710_v38 = vadd.f32 %v3026_v8, %v678_v27 }
 0x16b   :  { %2088 = vrsqrt.f32 %v601_v0  ;;  %v577_v14 = vmul.f32 0.0078125, %v552_v53  ;;  %1921 = vmatprep.mubr.msk.f32.mxu0 %vm2232_vm1, %v3686_v7  ;;  %2012 = vmatprep.mubr.msk.f32.mxu1 %vm2232_vm1, %v3686_v7  ;;  %v793_v22 = vmul.f32 %v3009_v59, %v761_v36  ;;  %v679_v55 = vmul.f32 %v3014_v58, %v647_v43  ;;  %v516_v41 = vpop.xlane.xlu1 %515 }
 0x16c   :  { %v2083_v4 = vpop.eup %2082  ;;  %v416_v62 = vpop.xlane.xlu0 %415  ;;  %v849_v57 = vmax.f32 %v824_v42, 0.0  ;;  %v735_v39 = vmax.f32 %v710_v38, 0.0 }
 0x16d   :  { %v602_v6 = vadd.f32 1e-05, %v577_v14  ;;  %v553_v13 = vadd.f32 %v516_v41, %v416_v62  ;;  %v825_v19 = vadd.f32 %v3021_v50, %v793_v22  ;;  %v711_v45 = vadd.f32 %v3026_v8, %v679_v55 }
 0x16e   :  { %1922 = vmatmul.mubr.msk.f32.gmra.mxu0 %vm84_vm0, %v849_v57  ;;  %2013 = vmatmul.mubr.msk.f32.gmra.mxu1 %vm84_vm0, %v735_v39  ;;  %v762_v9 = vmul.f32 %v2083_v4, %v2860_v21  ;;  %v648_v35 = vmul.f32 %v2083_v4, %v2857_v44 }
 0x16f   :  { %2090 = vrsqrt.f32 %v602_v6  ;;  %v578_v25 = vmul.f32 0.0078125, %v553_v13  ;;  %1924 = vmatprep.mubr.msk.f32.mxu0 %vm2232_vm1, %v3686_v7  ;;  %2015 = vmatprep.mubr.msk.f32.mxu1 %vm2232_vm1, %v3686_v7  ;;  %v850_v17 = vmax.f32 %v825_v19, 0.0  ;;  %v736_v24 = vmax.f32 %v711_v45, 0.0  ;;  %v519_v46 = vpop.xlane.xlu1 %518 }
 0x170   :  { %v2085_v31 = vpop.eup %2084  ;;  %v419_v16 = vpop.xlane.xlu0 %418  ;;  %v794_v51 = vmul.f32 %v3009_v59, %v762_v9  ;;  %v680_v30 = vmul.f32 %v3014_v58, %v648_v35 }
 0x171   :  { %v603_v21 = vadd.f32 1e-05, %v578_v25  ;;  %v554_v52 = vadd.f32 %v519_v46, %v419_v16  ;;  %v763_v44 = vmul.f32 %v2085_v31, %v2876_v2  ;;  %v649_v28 = vmul.f32 %v2085_v31, %v2873_v23 }
 0x172   :  { %1925 = vmatmul.mubr.msk.f32.gmra.mxu0 %vm84_vm0, %v850_v17  ;;  %2016 = vmatmul.mubr.msk.f32.gmra.mxu1 %vm84_vm0, %v736_v24  ;;  %v826_v54 = vadd.f32 %v3021_v50, %v794_v51  ;;  %v712_v47 = vadd.f32 %v3026_v8, %v680_v30 }
 0x173   :  { %2092 = vrsqrt.f32 %v603_v21  ;;  %v579_v37 = vmul.f32 0.0078125, %v554_v52  ;;  %1927 = vmatprep.mubr.msk.f32.mxu0 %vm2232_vm1, %v3686_v7  ;;  %2018 = vmatprep.mubr.msk.f32.mxu1 %vm2232_vm1, %v3686_v7  ;;  %v795_v2 = vmul.f32 %v3009_v59, %v763_v44  ;;  %v681_v23 = vmul.f32 %v3014_v58, %v649_v28  ;;  %v522_v20 = vpop.xlane.xlu1 %521 }
 0x174   :  { %v2087_v63 = vpop.eup %2086  ;;  %v422_v5 = vpop.xlane.xlu0 %421  ;;  %v851_v12 = vmax.f32 %v826_v54, 0.0  ;;  %v737_v32 = vmax.f32 %v712_v47, 0.0 }
 0x175   :  { %v604_v61 = vadd.f32 1e-05, %v579_v37  ;;  %v555_v11 = vadd.f32 %v522_v20, %v422_v5  ;;  %v827_v27 = vadd.f32 %v3021_v50, %v795_v2  ;;  %v713_v0 = vadd.f32 %v3026_v8, %v681_v23 }
 0x176   :  { %1928 = vmatmul.mubr.msk.f32.gmra.mxu0 %vm84_vm0, %v851_v12  ;;  %2019 = vmatmul.mubr.msk.f32.gmra.mxu1 %vm84_vm0, %v737_v32  ;;  %v764_v53 = vmul.f32 %v2087_v63, %v2888_v56  ;;  %v650_v36 = vmul.f32 %v2087_v63, %v2885_v15 }
 0x177   :  { %2094 = vrsqrt.f32 %v604_v61  ;;  %v580_v43 = vmul.f32 0.0078125, %v555_v11  ;;  %1930 = vmatprep.mubr.msk.f32.mxu0 %vm2232_vm1, %v3686_v7  ;;  %2021 = vmatprep.mubr.msk.f32.mxu1 %vm2232_vm1, %v3686_v7  ;;  %v852_v42 = vmax.f32 %v827_v27, 0.0  ;;  %v738_v38 = vmax.f32 %v713_v0, 0.0  ;;  %v525_v22 = vpop.xlane.xlu1 %524 }
 0x178   :  { %v2089_v14 = vpop.eup %2088  ;;  %v425_v55 = vpop.xlane.xlu0 %424  ;;  %v796_v4 = vmul.f32 %v3009_v59, %v764_v53  ;;  %v682_v41 = vmul.f32 %v3014_v58, %v650_v36 }
 0x179   :  { %v605_v56 = vadd.f32 1e-05, %v580_v43  ;;  %v556_v62 = vadd.f32 %v525_v22, %v425_v55  ;;  %v765_v15 = vmul.f32 %v2089_v14, %v2900_v60  ;;  %v651_v57 = vmul.f32 %v2089_v14, %v2897_v49 }
 0x17a   :  { %1931 = vmatmul.mubr.msk.f32.gmra.mxu0 %vm84_vm0, %v852_v42  ;;  %2022 = vmatmul.mubr.msk.f32.gmra.mxu1 %vm84_vm0, %v738_v38  ;;  %v828_v39 = vadd.f32 %v3021_v50, %v796_v4  ;;  %v714_v6 = vadd.f32 %v3026_v8, %v682_v41 }
 0x17b   :  { %2096 = vrsqrt.f32 %v605_v56  ;;  %v581_v13 = vmul.f32 0.0078125, %v556_v62  ;;  %1933 = vmatprep.mubr.msk.f32.mxu0 %vm2232_vm1, %v3686_v7  ;;  %2024 = vmatprep.mubr.msk.f32.mxu1 %vm2232_vm1, %v3686_v7  ;;  %v797_v60 = vmul.f32 %v3009_v59, %v765_v15  ;;  %v683_v49 = vmul.f32 %v3014_v58, %v651_v57  ;;  %v528_v45 = vpop.xlane.xlu1 %527 }
 0x17c   :  { %v2091_v19 = vpop.eup %2090  ;;  %v428_v9 = vpop.xlane.xlu0 %427  ;;  %v853_v35 = vmax.f32 %v828_v39, 0.0  ;;  %v739_v25 = vmax.f32 %v714_v6, 0.0 }
 0x17d   :  { %v606_v17 = vadd.f32 1e-05, %v581_v13  ;;  %v557_v24 = vadd.f32 %v528_v45, %v428_v9  ;;  %v829_v31 = vadd.f32 %v3021_v50, %v797_v60  ;;  %v715_v46 = vadd.f32 %v3026_v8, %v683_v49 }
 0x17e   :  { %1934 = vmatmul.mubr.msk.f32.gmra.mxu0 %vm84_vm0, %v853_v35  ;;  %2025 = vmatmul.mubr.msk.f32.gmra.mxu1 %vm84_vm0, %v739_v25  ;;  %v766_v16 = vmul.f32 %v2091_v19, %v2912_v3  ;;  %v652_v51 = vmul.f32 %v2091_v19, %v2909_v29 }
 0x17f   :  { %2098 = vrsqrt.f32 %v606_v17  ;;  %v582_v30 = vmul.f32 0.0078125, %v557_v24  ;;  %1936 = vmatprep.mubr.msk.f32.mxu0 %vm2232_vm1, %v3686_v7  ;;  %2027 = vmatprep.mubr.msk.f32.mxu1 %vm2232_vm1, %v3686_v7  ;;  %v854_v21 = vmax.f32 %v829_v31, 0.0  ;;  %v740_v52 = vmax.f32 %v715_v46, 0.0  ;;  %v531_v28 = vpop.xlane.xlu1 %530  ;;  %v3687_v31 = vld [vmem:[#allocation6_spill] sm:$0xff] }
 0x180   :  { %v2093_v44 = vpop.eup %2092  ;;  %v431_v54 = vpop.xlane.xlu0 %430  ;;  %v798_v47 = vmul.f32 %v3009_v59, %v766_v16  ;;  %v684_v37 = vmul.f32 %v3014_v58, %v652_v51  ;;  %v3688_v16 = vld [vmem:[#allocation5_spill] sm:$0xff] }
 0x181   :  { %v607_v3 = vadd.f32 1e-05, %v582_v30  ;;  %v558_v2 = vadd.f32 %v531_v28, %v431_v54  ;;  %v767_v29 = vmul.f32 %v2093_v44, %v2924_v10  ;;  %v653_v23 = vmul.f32 %v2093_v44, %v2921_v48 }
 0x182   :  { %1937 = vmatmul.mubr.msk.f32.gmra.mxu0 %vm84_vm0, %v854_v21  ;;  %2028 = vmatmul.mubr.msk.f32.gmra.mxu1 %vm84_vm0, %v740_v52  ;;  %v830_v63 = vadd.f32 %v3021_v50, %v798_v47  ;;  %v716_v20 = vadd.f32 %v3026_v8, %v684_v37  ;;  %v3689_v37 = vld [vmem:[#allocation8_spill] sm:$0xff] }
 0x183   :  { %2100 = vrsqrt.f32 %v607_v3  ;;  %v583_v5 = vmul.f32 0.0078125, %v558_v2  ;;  %1939 = vmatprep.mubr.msk.f32.mxu0 %vm2232_vm1, %v3686_v7  ;;  %2030 = vmatprep.mubr.msk.f32.mxu1 %vm2232_vm1, %v3686_v7  ;;  %v799_v10 = vmul.f32 %v3009_v59, %v767_v29  ;;  %v685_v48 = vmul.f32 %v3014_v58, %v653_v23  ;;  %v534_v32 = vpop.xlane.xlu1 %533  ;;  %v3690_v2 = vld [vmem:[#allocation7_spill] sm:$0xff] }
 0x184   :  { %v2095_v12 = vpop.eup %2094  ;;  %v434_v61 = vpop.xlane.xlu0 %433  ;;  %v855_v11 = vmax.f32 %v830_v63, 0.0  ;;  %v741_v27 = vmax.f32 %v716_v20, 0.0 }
 0x185   :  { %v608_v0 = vadd.f32 1e-05, %v583_v5  ;;  %v559_v53 = vadd.f32 %v534_v32, %v434_v61  ;;  %v831_v36 = vadd.f32 %v3021_v50, %v799_v10  ;;  %v717_v43 = vadd.f32 %v3026_v8, %v685_v48  ;;  %v3691_v32 = vld [vmem:[#allocation2_spill] sm:$0xff] }
 0x186   :  { %1940 = vmatmul.mubr.msk.f32.gmra.mxu0 %vm84_vm0, %v855_v11  ;;  %2031 = vmatmul.mubr.msk.f32.gmra.mxu1 %vm84_vm0, %v741_v27  ;;  %v768_v42 = vmul.f32 %v2095_v12, %v2936_v18  ;;  %v654_v38 = vmul.f32 %v2095_v12, %v2933_v1  ;;  %v3692_v11 = vld [vmem:[#allocation9_spill] sm:$0xff] }
 0x187   :  { %2102 = vrsqrt.f32 %v608_v0  ;;  %v584_v14 = vmul.f32 0.0078125, %v559_v53  ;;  %1942 = vmatprep.mubr.msk.f32.mxu0 %vm2232_vm1, %v3686_v7  ;;  %2033 = vmatprep.mubr.msk.f32.mxu1 %vm2232_vm1, %v3686_v7  ;;  %v856_v22 = vmax.f32 %v831_v36, 0.0  ;;  %v742_v55 = vmax.f32 %v717_v43, 0.0 }
 0x188   :  { %v2097_v4 = vpop.eup %2096  ;;  %v800_v41 = vmul.f32 %v3009_v59, %v768_v42  ;;  %v686_v56 = vmul.f32 %v3014_v58, %v654_v38 }
 0x189   :  { %v609_v62 = vadd.f32 1e-05, %v584_v14  ;;  %v769_v18 = vmul.f32 %v2097_v4, %v2948_v26  ;;  %v655_v1 = vmul.f32 %v2097_v4, %v2945_v33 }
 0x18a   :  { %1943 = vmatmul.mubr.msk.f32.gmra.mxu0 %vm84_vm0, %v856_v22  ;;  %2034 = vmatmul.mubr.msk.f32.gmra.mxu1 %vm84_vm0, %v742_v55  ;;  %v832_v15 = vadd.f32 %v3021_v50, %v800_v41  ;;  %v718_v57 = vadd.f32 %v3026_v8, %v686_v56 }
 0x18b   :  { %2104 = vrsqrt.f32 %v609_v62  ;;  %1945 = vmatprep.mubr.msk.f32.mxu0 %vm2232_vm1, %v3686_v7  ;;  %2036 = vmatprep.mubr.msk.f32.mxu1 %vm2232_vm1, %v3686_v7  ;;  %v801_v39 = vmul.f32 %v3009_v59, %v769_v18  ;;  %v687_v26 = vmul.f32 %v3014_v58, %v655_v1 }
 0x18c   :  { %v2099_v33 = vpop.eup %2098  ;;  %v857_v6 = vmax.f32 %v832_v15, 0.0  ;;  %v743_v13 = vmax.f32 %v718_v57, 0.0 }
 0x18d   :  { %v833_v60 = vadd.f32 %v3021_v50, %v801_v39  ;;  %v719_v49 = vadd.f32 %v3026_v8, %v687_v26  ;;  %v770_v19 = vmul.f32 %v2099_v33, %v2960_v34  ;;  %v656_v45 = vmul.f32 %v2099_v33, %v2957_v40 }
 0x18e   :  { %1946 = vmatmul.mubr.msk.f32.gmra.mxu0 %vm84_vm0, %v857_v6  ;;  %2037 = vmatmul.mubr.msk.f32.gmra.mxu1 %vm84_vm0, %v743_v13 }
 0x18f   :  { %1948 = vmatprep.mubr.msk.f32.mxu0 %vm2232_vm1, %v3686_v7  ;;  %2039 = vmatprep.mubr.msk.f32.mxu1 %vm2232_vm1, %v3686_v7  ;;  %v858_v9 = vmax.f32 %v833_v60, 0.0  ;;  %v744_v35 = vmax.f32 %v719_v49, 0.0  ;;  %v802_v25 = vmul.f32 %v3009_v59, %v770_v19  ;;  %v688_v17 = vmul.f32 %v3014_v58, %v656_v45 }
 0x190   :  { %v2101_v24 = vpop.eup %2100 }
 0x191   :  { %v834_v34 = vadd.f32 %v3021_v50, %v802_v25  ;;  %v720_v40 = vadd.f32 %v3026_v8, %v688_v17  ;;  %v771_v46 = vmul.f32 %v2101_v24, %v3687_v31  ;;  %v657_v51 = vmul.f32 %v2101_v24, %v3688_v16 }
 0x192   :  { %1949 = vmatmul.mubr.msk.f32.gmra.mxu0 %vm84_vm0, %v858_v9  ;;  %2040 = vmatmul.mubr.msk.f32.gmra.mxu1 %vm84_vm0, %v744_v35 }
 0x193   :  { %1951 = vmatprep.mubr.msk.f32.mxu0 %vm2232_vm1, %v3686_v7  ;;  %2042 = vmatprep.mubr.msk.f32.mxu1 %vm2232_vm1, %v3686_v7  ;;  %v859_v30 = vmax.f32 %v834_v34, 0.0  ;;  %v745_v21 = vmax.f32 %v720_v40, 0.0  ;;  %v803_v52 = vmul.f32 %v3009_v59, %v771_v46  ;;  %v689_v44 = vmul.f32 %v3014_v58, %v657_v51 }
 0x194   :  { %v2103_v28 = vpop.eup %2102 }
 0x195   :  { %v835_v54 = vadd.f32 %v3021_v50, %v803_v52  ;;  %v721_v47 = vadd.f32 %v3026_v8, %v689_v44  ;;  %v772_v3 = vmul.f32 %v2103_v28, %v3689_v37  ;;  %v658_v29 = vmul.f32 %v2103_v28, %v3690_v2 }
 0x196   :  { %1952 = vmatmul.mubr.msk.f32.gmra.mxu0 %vm84_vm0, %v859_v30  ;;  %2043 = vmatmul.mubr.msk.f32.gmra.mxu1 %vm84_vm0, %v745_v21 }
 0x197   :  { %1954 = vmatprep.mubr.msk.f32.mxu0 %vm2232_vm1, %v3686_v7  ;;  %2045 = vmatprep.mubr.msk.f32.mxu1 %vm2232_vm1, %v3686_v7  ;;  %v860_v23 = vmax.f32 %v835_v54, 0.0  ;;  %v746_v63 = vmax.f32 %v721_v47, 0.0  ;;  %v804_v20 = vmul.f32 %v3009_v59, %v772_v3  ;;  %v690_v5 = vmul.f32 %v3014_v58, %v658_v29 }
 0x198   :  { %v2105_v10 = vpop.eup %2104 }
 0x199   :  { %v836_v48 = vadd.f32 %v3021_v50, %v804_v20  ;;  %v722_v12 = vadd.f32 %v3026_v8, %v690_v5  ;;  %v773_v61 = vmul.f32 %v2105_v10, %v3691_v32  ;;  %v659_v27 = vmul.f32 %v2105_v10, %v3692_v11 }
 0x19a   :  { %1955 = vmatmul.mubr.msk.f32.gmra.mxu0 %vm84_vm0, %v860_v23  ;;  %2046 = vmatmul.mubr.msk.f32.gmra.mxu1 %vm84_vm0, %v746_v63 }
 0x19b   :  { %1957 = vmatprep.mubr.msk.f32.mxu0 %vm2232_vm1, %v3686_v7  ;;  %2048 = vmatprep.mubr.msk.f32.mxu1 %vm2232_vm1, %v3686_v7  ;;  %v861_v0 = vmax.f32 %v836_v48, 0.0  ;;  %v747_v53 = vmax.f32 %v722_v12, 0.0  ;;  %v805_v36 = vmul.f32 %v3009_v59, %v773_v61  ;;  %v691_v43 = vmul.f32 %v3014_v58, %v659_v27 }
 0x19d   :  { %v837_v42 = vadd.f32 %v3021_v50, %v805_v36  ;;  %v723_v38 = vadd.f32 %v3026_v8, %v691_v43  ;;  %v3325_v50 = vld [vmem:[%s3660_s8] ss:$0 sm:$0xff] }
 0x19e   :  { %1958 = vmatmul.mubr.msk.f32.gmra.mxu0 %vm84_vm0, %v861_v0  ;;  %2049 = vmatmul.mubr.msk.f32.gmra.mxu1 %vm84_vm0, %v747_v53 }
 0x19f   :  { %1960 = vmatprep.mubr.msk.f32.mxu0 %vm2232_vm1, %v3686_v7  ;;  %2051 = vmatprep.mubr.msk.f32.mxu1 %vm2232_vm1, %v3686_v7  ;;  %v862_v14 = vmax.f32 %v837_v42, 0.0  ;;  %v748_v22 = vmax.f32 %v723_v38, 0.0 }
 0x1a2   :  { %1961 = vmatmul.mubr.msk.f32.gmra.mxu0 %vm84_vm0, %v862_v14  ;;  %2052 = vmatmul.mubr.msk.f32.gmra.mxu1 %vm84_vm0, %v748_v22 }
 0x200   :  { %v1020_v59 = vpop.f32.mrf.mxu0  ;;  %v1285_v58 = vpop.f32.mrf.mxu1 }
 0x201   :  { %v1286_v8 = vadd.f32 %v1285_v58, %v1020_v59 }
 0x202   :  { %v1890_v55 = vpop.f32.mrf.mxu0  ;;  %v1981_v4 = vpop.f32.mrf.mxu1 }
 0x203   :  { %v1416_v41 = vadd.f32 %v3325_v50, %v1286_v8 }
 0x204   :  { %v1025_v7 = vpop.f32.mrf.mxu0 }
 0x205   :  { %v1441_v56 = vsub.f32 0.0, %v1416_v41  ;;  %v1290_v62 = vpop.f32.mrf.mxu1 }
 0x206   :  { %v1291_v18 = vadd.f32 %v1290_v62, %v1025_v7  ;;  %v1893_v15 = vpop.f32.mrf.mxu0 }
 0x207   :  { %v1466_v1 = vmul.f32 1.442695, %v1441_v56  ;;  %v1984_v57 = vpop.f32.mrf.mxu1 }
 0x208   :  { %v1417_v39 = vadd.f32 %v3325_v50, %v1291_v18  ;;  %v1030_v26 = vpop.f32.mrf.mxu0 }
 0x209   :  { %2106 = vpow2.f32 %v1466_v1  ;;  %v1295_v33 = vpop.f32.mrf.mxu1 }
 0x20a   :  { %v1442_v6 = vsub.f32 0.0, %v1417_v39  ;;  %v1296_v13 = vadd.f32 %v1295_v33, %v1030_v26  ;;  %v1896_v60 = vpop.f32.mrf.mxu0 }
 0x20b   :  { %v1987_v49 = vpop.f32.mrf.mxu1 }
 0x20c   :  { %v1468_v19 = vmul.f32 1.442695, %v1442_v6  ;;  %v1418_v45 = vadd.f32 %v3325_v50, %v1296_v13  ;;  %v1035_v9 = vpop.f32.mrf.mxu0 }
 0x20d   :  { %v1300_v35 = vpop.f32.mrf.mxu1 }
 0x20e   :  { %2108 = vpow2.f32 %v1468_v19  ;;  %v1443_v25 = vsub.f32 0.0, %v1418_v45  ;;  %v1301_v17 = vadd.f32 %v1300_v35, %v1035_v9  ;;  %v1899_v24 = vpop.f32.mrf.mxu0 }
 0x20f   :  { %v1990_v34 = vpop.f32.mrf.mxu1 }
 0x210   :  { %v1470_v40 = vmul.f32 1.442695, %v1443_v25  ;;  %v1419_v31 = vadd.f32 %v3325_v50, %v1301_v17  ;;  %v1040_v46 = vpop.f32.mrf.mxu0 }
 0x211   :  { %v1305_v16 = vpop.f32.mrf.mxu1 }
 0x212   :  { %2110 = vpow2.f32 %v1470_v40  ;;  %v1444_v51 = vsub.f32 0.0, %v1419_v31  ;;  %v1306_v30 = vadd.f32 %v1305_v16, %v1040_v46  ;;  %v1902_v21 = vpop.f32.mrf.mxu0 }
 0x213   :  { %v1993_v52 = vpop.f32.mrf.mxu1 }
 0x214   :  { %v1472_v44 = vmul.f32 1.442695, %v1444_v51  ;;  %v1420_v28 = vadd.f32 %v3325_v50, %v1306_v30 }
 0x216   :  { %v1045_v54 = vpop.f32.mrf.mxu0  ;;  %v1310_v47 = vpop.f32.mrf.mxu1  ;;  %2112 = vpow2.f32 %v1472_v44  ;;  %v1445_v3 = vsub.f32 0.0, %v1420_v28 }
 0x217   :  { %v2107_v37 = vpop.eup %2106  ;;  %v1311_v2 = vadd.f32 %v1310_v47, %v1045_v54 }
 0x218   :  { %v1516_v29 = vadd.f32 1.0, %v2107_v37  ;;  %v1905_v23 = vpop.f32.mrf.mxu0  ;;  %v1996_v63 = vpop.f32.mrf.mxu1  ;;  %v1474_v20 = vmul.f32 1.442695, %v1445_v3 }
 0x219   :  { %v1421_v5 = vadd.f32 %v3325_v50, %v1311_v2 }
 0x21a   :  { %2114 = vrcp.f32 %v1516_v29  ;;  %v1050_v10 = vpop.f32.mrf.mxu0  ;;  %v1315_v48 = vpop.f32.mrf.mxu1 }
 0x21b   :  { %2116 = vpow2.f32 %v1474_v20  ;;  %v1446_v12 = vsub.f32 0.0, %v1421_v5  ;;  %v1316_v32 = vadd.f32 %v1315_v48, %v1050_v10  ;;  %v2109_v61 = vpop.eup %2108 }
 0x21c   :  { %v1908_v11 = vpop.f32.mrf.mxu0  ;;  %v1999_v27 = vpop.f32.mrf.mxu1  ;;  %v1517_v0 = vadd.f32 1.0, %v2109_v61 }
 0x21d   :  { %v1476_v53 = vmul.f32 1.442695, %v1446_v12  ;;  %v1422_v36 = vadd.f32 %v3325_v50, %v1316_v32 }
 0x21e   :  { %v1055_v43 = vpop.f32.mrf.mxu0  ;;  %v1320_v42 = vpop.f32.mrf.mxu1  ;;  %2118 = vrcp.f32 %v1517_v0 }
 0x21f   :  { %v1447_v38 = vsub.f32 0.0, %v1422_v36  ;;  %v1321_v14 = vadd.f32 %v1320_v42, %v1055_v43  ;;  %v2111_v22 = vpop.eup %2110  ;;  %2120 = vpow2.f32 %v1476_v53 }
 0x220   :  { %v1911_v59 = vpop.f32.mrf.mxu0  ;;  %v2002_v58 = vpop.f32.mrf.mxu1  ;;  %v1518_v8 = vadd.f32 1.0, %v2111_v22 }
 0x221   :  { %v1478_v55 = vmul.f32 1.442695, %v1447_v38  ;;  %v1423_v4 = vadd.f32 %v3325_v50, %v1321_v14 }
 0x222   :  { %v1060_v41 = vpop.f32.mrf.mxu0  ;;  %v1325_v56 = vpop.f32.mrf.mxu1  ;;  %2122 = vrcp.f32 %v1518_v8 }
 0x223   :  { %v1448_v7 = vsub.f32 0.0, %v1423_v4  ;;  %v1326_v62 = vadd.f32 %v1325_v56, %v1060_v41  ;;  %v2113_v18 = vpop.eup %2112  ;;  %2124 = vpow2.f32 %v1478_v55 }
 0x224   :  { %v1914_v1 = vpop.f32.mrf.mxu0  ;;  %v2005_v15 = vpop.f32.mrf.mxu1  ;;  %v1519_v57 = vadd.f32 1.0, %v2113_v18 }
 0x225   :  { %v1480_v39 = vmul.f32 1.442695, %v1448_v7  ;;  %v1424_v26 = vadd.f32 %v3325_v50, %v1326_v62 }
 0x226   :  { %v1065_v33 = vpop.f32.mrf.mxu0  ;;  %v1330_v6 = vpop.f32.mrf.mxu1  ;;  %2126 = vrcp.f32 %v1519_v57 }
 0x227   :  { %v2115_v13 = vpop.eup %2114  ;;  %v1449_v60 = vsub.f32 0.0, %v1424_v26  ;;  %v1331_v49 = vadd.f32 %v1330_v6, %v1065_v33  ;;  %2128 = vpow2.f32 %v1480_v39 }
 0x228   :  { %v2117_v19 = vpop.eup %2116  ;;  %v1917_v45 = vpop.f32.mrf.mxu0  ;;  %v1566_v35 = vsel %vm84_vm0, %v2115_v13, 0.0 }
 0x229   :  { %v2008_v9 = vpop.f32.mrf.mxu1  ;;  %v1520_v25 = vadd.f32 1.0, %v2117_v19  ;;  %v1482_v17 = vmul.f32 1.442695, %v1449_v60  ;;  %v1425_v24 = vadd.f32 %v3325_v50, %v1331_v49  ;;  %1567 = vadd.xlane.f32.xlu0 %v1566_v35 }
 0x22a   :  { %v1070_v34 = vpop.f32.mrf.mxu0 }
 0x22b   :  { %v1335_v40 = vpop.f32.mrf.mxu1  ;;  %2130 = vrcp.f32 %v1520_v25  ;;  %v1450_v31 = vsub.f32 0.0, %v1425_v24  ;;  %v2119_v16 = vpop.eup %2118 }
 0x22c   :  { %v1336_v46 = vadd.f32 %v1335_v40, %v1070_v34  ;;  %2132 = vpow2.f32 %v1482_v17  ;;  %v1920_v51 = vpop.f32.mrf.mxu0  ;;  %v2121_v21 = vpop.eup %2120  ;;  %v1569_v28 = vsel %vm84_vm0, %v2119_v16, 0.0 }
 0x22d   :  { %v2011_v30 = vpop.f32.mrf.mxu1  ;;  %v1484_v52 = vmul.f32 1.442695, %v1450_v31  ;;  %v1521_v54 = vadd.f32 1.0, %v2121_v21  ;;  %1570 = vadd.xlane.f32.xlu1 %v1569_v28 }
 0x22e   :  { %v1426_v44 = vadd.f32 %v3325_v50, %v1336_v46  ;;  %v1075_v47 = vpop.f32.mrf.mxu0 }
 0x22f   :  { %v1340_v37 = vpop.f32.mrf.mxu1  ;;  %2134 = vpow2.f32 %v1484_v52  ;;  %v2123_v29 = vpop.eup %2122 }
 0x230   :  { %v1451_v3 = vsub.f32 0.0, %v1426_v44  ;;  %v1341_v2 = vadd.f32 %v1340_v37, %v1075_v47  ;;  %2136 = vrcp.f32 %v1521_v54  ;;  %v1923_v23 = vpop.f32.mrf.mxu0  ;;  %v2125_v20 = vpop.eup %2124  ;;  %v1572_v48 = vsel %vm84_vm0, %v2123_v29, 0.0 }
 0x231   :  { %v2014_v63 = vpop.f32.mrf.mxu1  ;;  %v1522_v12 = vadd.f32 1.0, %v2125_v20  ;;  %1573 = vadd.xlane.f32.xlu0 %v1572_v48 }
 0x232   :  { %v1486_v5 = vmul.f32 1.442695, %v1451_v3  ;;  %v1427_v10 = vadd.f32 %v3325_v50, %v1341_v2  ;;  %v1080_v32 = vpop.f32.mrf.mxu0 }
 0x233   :  { %v1345_v61 = vpop.f32.mrf.mxu1  ;;  %v2127_v0 = vpop.eup %2126 }
 0x234   :  { %2138 = vpow2.f32 %v1486_v5  ;;  %v1452_v11 = vsub.f32 0.0, %v1427_v10  ;;  %v1346_v27 = vadd.f32 %v1345_v61, %v1080_v32  ;;  %v1926_v53 = vpop.f32.mrf.mxu0  ;;  %v2129_v43 = vpop.eup %2128  ;;  %v1575_v14 = vsel %vm84_vm0, %v2127_v0, 0.0 }
 0x235   :  { %2140 = vrcp.f32 %v1522_v12  ;;  %v2017_v36 = vpop.f32.mrf.mxu1  ;;  %v1523_v22 = vadd.f32 1.0, %v2129_v43  ;;  %1576 = vadd.xlane.f32.xlu1 %v1575_v14 }
 0x236   :  { %v1488_v42 = vmul.f32 1.442695, %v1452_v11  ;;  %v1428_v38 = vadd.f32 %v3325_v50, %v1346_v27  ;;  %v1085_v59 = vpop.f32.mrf.mxu0 }
 0x237   :  { %v1350_v58 = vpop.f32.mrf.mxu1 }
 0x238   :  { %2142 = vpow2.f32 %v1488_v42  ;;  %v1453_v8 = vsub.f32 0.0, %v1428_v38  ;;  %v1351_v55 = vadd.f32 %v1350_v58, %v1085_v59  ;;  %v2131_v4 = vpop.eup %2130  ;;  %v1929_v41 = vpop.f32.mrf.mxu0 }
 0x239   :  { %2144 = vrcp.f32 %v1523_v22  ;;  %v2020_v56 = vpop.f32.mrf.mxu1  ;;  %v2133_v7 = vpop.eup %2132  ;;  %v1578_v1 = vsel %vm84_vm0, %v2131_v4, 0.0 }
 0x23a   :  { %v1490_v62 = vmul.f32 1.442695, %v1453_v8  ;;  %v1429_v18 = vadd.f32 %v3325_v50, %v1351_v55  ;;  %v1524_v15 = vadd.f32 1.0, %v2133_v7  ;;  %1579 = vadd.xlane.f32.xlu0 %v1578_v1  ;;  %v1090_v57 = vpop.f32.mrf.mxu0 }
 0x23b   :  { %v1355_v39 = vpop.f32.mrf.mxu1 }
 0x23c   :  { %2146 = vpow2.f32 %v1490_v62  ;;  %v1454_v26 = vsub.f32 0.0, %v1429_v18  ;;  %v1356_v33 = vadd.f32 %v1355_v39, %v1090_v57  ;;  %v2135_v6 = vpop.eup %2134  ;;  %v1932_v13 = vpop.f32.mrf.mxu0 }
 0x23d   :  { %2148 = vrcp.f32 %v1524_v15  ;;  %v2023_v60 = vpop.f32.mrf.mxu1  ;;  %v2137_v49 = vpop.eup %2136  ;;  %v1525_v19 = vadd.f32 1.0, %v2135_v6 }
 0x23e   :  { %v1492_v45 = vmul.f32 1.442695, %v1454_v26  ;;  %v1430_v9 = vadd.f32 %v3325_v50, %v1356_v33  ;;  %v1581_v35 = vsel %vm84_vm0, %v2137_v49, 0.0  ;;  %v1095_v25 = vpop.f32.mrf.mxu0 }
 0x23f   :  { %v1360_v17 = vpop.f32.mrf.mxu1  ;;  %2150 = vrcp.f32 %v1525_v19  ;;  %1582 = vadd.xlane.f32.xlu1 %v1581_v35 }
 0x240   :  { %v1455_v24 = vsub.f32 0.0, %v1430_v9  ;;  %v1361_v34 = vadd.f32 %v1360_v17, %v1095_v25  ;;  %2152 = vpow2.f32 %v1492_v45  ;;  %v1935_v31 = vpop.f32.mrf.mxu0 }
 0x241   :  { %v2139_v40 = vpop.eup %2138  ;;  %v2026_v46 = vpop.f32.mrf.mxu1 }
 0x242   :  { %v2141_v16 = vpop.eup %2140  ;;  %v1526_v51 = vadd.f32 1.0, %v2139_v40  ;;  %v1494_v30 = vmul.f32 1.442695, %v1455_v24  ;;  %v1431_v21 = vadd.f32 %v3325_v50, %v1361_v34  ;;  %v1100_v44 = vpop.f32.mrf.mxu0 }
 0x243   :  { %v1584_v52 = vsel %vm84_vm0, %v2141_v16, 0.0  ;;  %v1365_v28 = vpop.f32.mrf.mxu1 }
 0x244   :  { %2154 = vrcp.f32 %v1526_v51  ;;  %v1456_v54 = vsub.f32 0.0, %v1431_v21  ;;  %1585 = vadd.xlane.f32.xlu0 %v1584_v52  ;;  %v1366_v47 = vadd.f32 %v1365_v28, %v1100_v44  ;;  %v1938_v3 = vpop.f32.mrf.mxu0 }
 0x245   :  { %v2143_v37 = vpop.eup %2142  ;;  %2156 = vpow2.f32 %v1494_v30  ;;  %v2029_v2 = vpop.f32.mrf.mxu1 }
 0x246   :  { %v2145_v29 = vpop.eup %2144  ;;  %v1527_v23 = vadd.f32 1.0, %v2143_v37  ;;  %v1496_v63 = vmul.f32 1.442695, %v1456_v54  ;;  %v1432_v20 = vadd.f32 %v3325_v50, %v1366_v47  ;;  %v1105_v10 = vpop.f32.mrf.mxu0 }
 0x247   :  { %v1587_v5 = vsel %vm84_vm0, %v2145_v29, 0.0  ;;  %v1370_v48 = vpop.f32.mrf.mxu1 }
 0x248   :  { %2158 = vrcp.f32 %v1527_v23  ;;  %v1457_v12 = vsub.f32 0.0, %v1432_v20  ;;  %1588 = vadd.xlane.f32.xlu1 %v1587_v5  ;;  %v1371_v32 = vadd.f32 %v1370_v48, %v1105_v10  ;;  %v1941_v11 = vpop.f32.mrf.mxu0 }
 0x249   :  { %v2147_v61 = vpop.eup %2146  ;;  %2160 = vpow2.f32 %v1496_v63  ;;  %v2032_v27 = vpop.f32.mrf.mxu1 }
 0x24a   :  { %v2149_v0 = vpop.eup %2148  ;;  %v1528_v53 = vadd.f32 1.0, %v2147_v61  ;;  %v1498_v36 = vmul.f32 1.442695, %v1457_v12  ;;  %v1433_v43 = vadd.f32 %v3325_v50, %v1371_v32  ;;  %v1110_v38 = vpop.f32.mrf.mxu0 }
 0x24b   :  { %v1590_v42 = vsel %vm84_vm0, %v2149_v0, 0.0  ;;  %v1375_v14 = vpop.f32.mrf.mxu1 }
 0x24c   :  { %2162 = vrcp.f32 %v1528_v53  ;;  %v1458_v22 = vsub.f32 0.0, %v1433_v43  ;;  %1591 = vadd.xlane.f32.xlu0 %v1590_v42  ;;  %v1376_v59 = vadd.f32 %v1375_v14, %v1110_v38  ;;  %v2151_v58 = vpop.eup %2150  ;;  %v1944_v8 = vpop.f32.mrf.mxu0 }
 0x24d   :  { %2164 = vpow2.f32 %v1498_v36  ;;  %v2035_v55 = vpop.f32.mrf.mxu1  ;;  %v2153_v4 = vpop.eup %2152  ;;  %v1593_v7 = vsel %vm84_vm0, %v2151_v58, 0.0 }
 0x24e   :  { %v1500_v41 = vmul.f32 1.442695, %v1458_v22  ;;  %v1434_v56 = vadd.f32 %v3325_v50, %v1376_v59  ;;  %v1529_v62 = vadd.f32 1.0, %v2153_v4  ;;  %1594 = vadd.xlane.f32.xlu1 %v1593_v7  ;;  %v1115_v18 = vpop.f32.mrf.mxu0 }
 0x24f   :  { %v1380_v1 = vpop.f32.mrf.mxu1 }
 0x250   :  { %2166 = vpow2.f32 %v1500_v41  ;;  %v1459_v15 = vsub.f32 0.0, %v1434_v56  ;;  %v1381_v57 = vadd.f32 %v1380_v1, %v1115_v18  ;;  %v1947_v26 = vpop.f32.mrf.mxu0 }
 0x251   :  { %v2155_v39 = vpop.eup %2154  ;;  %2168 = vrcp.f32 %v1529_v62  ;;  %v2038_v33 = vpop.f32.mrf.mxu1 }
 0x252   :  { %v2157_v6 = vpop.eup %2156  ;;  %v1502_v13 = vmul.f32 1.442695, %v1459_v15  ;;  %v1435_v60 = vadd.f32 %v3325_v50, %v1381_v57  ;;  %v1596_v49 = vsel %vm84_vm0, %v2155_v39, 0.0  ;;  %v1120_v45 = vpop.f32.mrf.mxu0 }
 0x253   :  { %v1530_v19 = vadd.f32 1.0, %v2157_v6  ;;  %1597 = vadd.xlane.f32.xlu0 %v1596_v49  ;;  %v1385_v9 = vpop.f32.mrf.mxu1 }
 0x254   :  { %2170 = vpow2.f32 %v1502_v13  ;;  %v1460_v35 = vsub.f32 0.0, %v1435_v60  ;;  %v1386_v25 = vadd.f32 %v1385_v9, %v1120_v45  ;;  %v1950_v24 = vpop.f32.mrf.mxu0 }
 0x255   :  { %v2159_v17 = vpop.eup %2158  ;;  %2172 = vrcp.f32 %v1530_v19  ;;  %v2041_v34 = vpop.f32.mrf.mxu1 }
 0x256   :  { %v2161_v40 = vpop.eup %2160  ;;  %v1504_v31 = vmul.f32 1.442695, %v1460_v35  ;;  %v1436_v46 = vadd.f32 %v3325_v50, %v1386_v25  ;;  %v1599_v16 = vsel %vm84_vm0, %v2159_v17, 0.0  ;;  %v1125_v30 = vpop.f32.mrf.mxu0 }
 0x257   :  { %v1531_v51 = vadd.f32 1.0, %v2161_v40  ;;  %1600 = vadd.xlane.f32.xlu1 %v1599_v16  ;;  %v1390_v21 = vpop.f32.mrf.mxu1 }
 0x258   :  { %2174 = vpow2.f32 %v1504_v31  ;;  %v1461_v52 = vsub.f32 0.0, %v1436_v46  ;;  %v1391_v44 = vadd.f32 %v1390_v21, %v1125_v30  ;;  %v1953_v54 = vpop.f32.mrf.mxu0 }
 0x259   :  { %v2163_v28 = vpop.eup %2162  ;;  %2176 = vrcp.f32 %v1531_v51  ;;  %v2044_v47 = vpop.f32.mrf.mxu1 }
 0x25a   :  { %v2165_v37 = vpop.eup %2164  ;;  %v1506_v3 = vmul.f32 1.442695, %v1461_v52  ;;  %v1437_v2 = vadd.f32 %v3325_v50, %v1391_v44  ;;  %v1602_v29 = vsel %vm84_vm0, %v2163_v28, 0.0  ;;  %v1130_v63 = vpop.f32.mrf.mxu0 }
 0x25b   :  { %v1532_v23 = vadd.f32 1.0, %v2165_v37  ;;  %1603 = vadd.xlane.f32.xlu0 %v1602_v29  ;;  %v1395_v20 = vpop.f32.mrf.mxu1 }
 0x25c   :  { %2178 = vpow2.f32 %v1506_v3  ;;  %v1462_v5 = vsub.f32 0.0, %v1437_v2  ;;  %v1396_v10 = vadd.f32 %v1395_v20, %v1130_v63  ;;  %v1956_v12 = vpop.f32.mrf.mxu0 }
 0x25d   :  { %v2167_v48 = vpop.eup %2166  ;;  %2180 = vrcp.f32 %v1532_v23  ;;  %v2047_v32 = vpop.f32.mrf.mxu1 }
 0x25e   :  { %v2169_v61 = vpop.eup %2168  ;;  %v1533_v11 = vadd.f32 1.0, %v2167_v48  ;;  %v1508_v27 = vmul.f32 1.442695, %v1462_v5  ;;  %v1438_v0 = vadd.f32 %v3325_v50, %v1396_v10  ;;  %v1135_v36 = vpop.f32.mrf.mxu0  ;;  %v2206_v48 = vld [vmem:[%s3653_s1] sm:$0xff] }
 0x25f   :  { %v1605_v53 = vsel %vm84_vm0, %v2169_v61, 0.0  ;;  %v1400_v43 = vpop.f32.mrf.mxu1 }
 0x260   :  { %2182 = vrcp.f32 %v1533_v11  ;;  %v1463_v42 = vsub.f32 0.0, %v1438_v0  ;;  %1606 = vadd.xlane.f32.xlu1 %v1605_v53  ;;  %v1401_v38 = vadd.f32 %v1400_v43, %v1135_v36  ;;  %v1959_v22 = vpop.f32.mrf.mxu0 }
 0x261   :  { %v2171_v14 = vpop.eup %2170  ;;  %2184 = vpow2.f32 %v1508_v27  ;;  %v2050_v59 = vpop.f32.mrf.mxu1 }
 0x262   :  { %v2173_v58 = vpop.eup %2172  ;;  %v1534_v8 = vadd.f32 1.0, %v2171_v14  ;;  %v1510_v55 = vmul.f32 1.442695, %v1463_v42  ;;  %v1439_v4 = vadd.f32 %v3325_v50, %v1401_v38  ;;  %v1140_v56 = vpop.f32.mrf.mxu0 }
 0x263   :  { %v1608_v41 = vsel %vm84_vm0, %v2173_v58, 0.0  ;;  %v1405_v7 = vpop.f32.mrf.mxu1 }
 0x264   :  { %2186 = vrcp.f32 %v1534_v8  ;;  %v1464_v62 = vsub.f32 0.0, %v1439_v4  ;;  %1609 = vadd.xlane.f32.xlu0 %v1608_v41  ;;  %v1406_v18 = vadd.f32 %v1405_v7, %v1140_v56  ;;  %v1962_v15 = vpop.f32.mrf.mxu0 }
 0x265   :  { %v2175_v1 = vpop.eup %2174  ;;  %2188 = vpow2.f32 %v1510_v55  ;;  %v2053_v57 = vpop.f32.mrf.mxu1 }
 0x266   :  { %v2177_v39 = vpop.eup %2176  ;;  %v1535_v26 = vadd.f32 1.0, %v2175_v1  ;;  %v1512_v33 = vmul.f32 1.442695, %v1464_v62  ;;  %v1440_v6 = vadd.f32 %v3325_v50, %v1406_v18 }
 0x267   :  { %v1611_v13 = vsel %vm84_vm0, %v2177_v39, 0.0 }
 0x268   :  { %2190 = vrcp.f32 %v1535_v26  ;;  %v1465_v60 = vsub.f32 0.0, %v1440_v6  ;;  %1612 = vadd.xlane.f32.xlu1 %v1611_v13 }
 0x269   :  { %v2179_v49 = vpop.eup %2178  ;;  %2192 = vpow2.f32 %v1512_v33 }
 0x26a   :  { %v2181_v19 = vpop.eup %2180  ;;  %v1536_v45 = vadd.f32 1.0, %v2179_v49  ;;  %v1514_v9 = vmul.f32 1.442695, %v1465_v60 }
 0x26b   :  { %v1614_v35 = vsel %vm84_vm0, %v2181_v19, 0.0 }
 0x26c   :  { %2194 = vrcp.f32 %v1536_v45  ;;  %1615 = vadd.xlane.f32.xlu0 %v1614_v35 }
 0x26d   :  { %v2183_v25 = vpop.eup %2182  ;;  %2196 = vpow2.f32 %v1514_v9 }
 0x26e   :  { %v2185_v17 = vpop.eup %2184  ;;  %v1617_v24 = vsel %vm84_vm0, %v2183_v25, 0.0 }
 0x26f   :  { %v1537_v50 = vadd.f32 1.0, %v2185_v17  ;;  %1618 = vadd.xlane.f32.xlu1 %v1617_v24 }
 0x271   :  { %v2187_v34 = vpop.eup %2186  ;;  %2198 = vrcp.f32 %v1537_v50 }
 0x272   :  { %v2189_v40 = vpop.eup %2188  ;;  %v1620_v31 = vsel %vm84_vm0, %v2187_v34, 0.0 }
 0x273   :  { %v1538_v46 = vadd.f32 1.0, %v2189_v40  ;;  %1621 = vadd.xlane.f32.xlu0 %v1620_v31 }
 0x275   :  { %v2191_v16 = vpop.eup %2190  ;;  %2200 = vrcp.f32 %v1538_v46 }
 0x276   :  { %v2193_v51 = vpop.eup %2192  ;;  %v1623_v30 = vsel %vm84_vm0, %v2191_v16, 0.0 }
 0x277   :  { %v1539_v21 = vadd.f32 1.0, %v2193_v51  ;;  %1624 = vadd.xlane.f32.xlu1 %v1623_v30 }
 0x279   :  { %v2195_v52 = vpop.eup %2194  ;;  %2202 = vrcp.f32 %v1539_v21 }
 0x27a   :  { %v2197_v44 = vpop.eup %2196  ;;  %v1626_v28 = vsel %vm84_vm0, %v2195_v52, 0.0 }
 0x27b   :  { %v1540_v54 = vadd.f32 1.0, %v2197_v44  ;;  %1627 = vadd.xlane.f32.xlu0 %v1626_v28 }
 0x27d   :  { %2204 = vrcp.f32 %v1540_v54 }
 0x27e   :  { %v2199_v47 = vpop.eup %2198 }
 0x27f   :  { %v1629_v37 = vsel %vm84_vm0, %v2199_v47, 0.0 }
 0x280   :  { %1630 = vadd.xlane.f32.xlu1 %v1629_v37 }
 0x282   :  { %v2201_v3 = vpop.eup %2200 }
 0x283   :  { %v1632_v2 = vsel %vm84_vm0, %v2201_v3, 0.0 }
 0x284   :  { %1633 = vadd.xlane.f32.xlu0 %v1632_v2 }
 0x286   :  { %v2203_v29 = vpop.eup %2202 }
 0x287   :  { %v1635_v23 = vsel %vm84_vm0, %v2203_v29, 0.0 }
 0x288   :  { %1636 = vadd.xlane.f32.xlu1 %v1635_v23 }
 0x28a   :  { %v2205_v63 = vpop.eup %2204 }
 0x28b   :  { %v1638_v20 = vsel %vm84_vm0, %v2205_v63, 0.0 }
 0x28c   :  { %1639 = vadd.xlane.f32.xlu0 %v1638_v20 }
 0x2b2   :  { %v1568_v5 = vpop.xlane.xlu0 %1567 }
 0x2b3   :  { %v1642_v10 = vmul.f32 0.015625, %v1568_v5 }
 0x2b5   :  { %1668 = vst.msk [vmem:[%s3661_s10] sm:$0xff] %vm1667_vm2, %v1642_v10  ;;  %v1693_v12 = vmul.f32 %v2206_v48, %v1642_v10 }
 0x2b6   :  { %v1571_v32 = vpop.xlane.xlu1 %1570 }
 0x2b7   :  { %1718 = vst.msk [vmem:[%s3662_s9] sm:$0xff] %vm84_vm0, %v1693_v12  ;;  %v1643_v61 = vmul.f32 0.015625, %v1571_v32 }
 0x2b9   :  { %1669 = vst.msk [vmem:[%s3661_s10 + $0x8] sm:$0xff] %vm1667_vm2, %v1643_v61 }
 0x2ba   :  { %v1574_v0 = vpop.xlane.xlu0 %1573 }
 0x2bb   :  { %v1644_v53 = vmul.f32 0.015625, %v1574_v0 }
 0x2bd   :  { %1670 = vst.msk [vmem:[%s3661_s10 + $0x10] sm:$0xff] %vm1667_vm2, %v1644_v53 }
 0x2be   :  { %v2207_v11 = vld [vmem:[%s3653_s1 + $0x8] sm:$0xff]  ;;  %v1577_v42 = vpop.xlane.xlu1 %1576 }
 0x2bf   :  { %v1694_v27 = vmul.f32 %v2207_v11, %v1643_v61  ;;  %v1645_v38 = vmul.f32 0.015625, %v1577_v42 }
 0x2c1   :  { %1719 = vst.msk [vmem:[%s3662_s9 + $0x8] sm:$0xff] %vm84_vm0, %v1694_v27 }
 0x2c2   :  { %1671 = vst.msk [vmem:[%s3661_s10 + $0x18] sm:$0xff] %vm1667_vm2, %v1645_v38 }
 0x2c3   :  { %v1580_v59 = vpop.xlane.xlu0 %1579 }
 0x2c4   :  { %v1646_v58 = vmul.f32 0.015625, %v1580_v59 }
 0x2c6   :  { %1672 = vst.msk [vmem:[%s3661_s10 + $0x20] sm:$0xff] %vm1667_vm2, %v1646_v58 }
 0x2c8   :  { %v2208_v36 = vld [vmem:[%s3653_s1 + $0x10] sm:$0xff]  ;;  %v1583_v4 = vpop.xlane.xlu1 %1582 }
 0x2c9   :  { %v1695_v43 = vmul.f32 %v2208_v36, %v1644_v53  ;;  %v1647_v41 = vmul.f32 0.015625, %v1583_v4 }
 0x2cb   :  { %1720 = vst.msk [vmem:[%s3662_s9 + $0x10] sm:$0xff] %vm84_vm0, %v1695_v43 }
 0x2cc   :  { %1673 = vst.msk [vmem:[%s3661_s10 + $0x28] sm:$0xff] %vm1667_vm2, %v1647_v41 }
 0x2cd   :  { %v1586_v62 = vpop.xlane.xlu0 %1585 }
 0x2ce   :  { %v1648_v18 = vmul.f32 0.015625, %v1586_v62 }
 0x2d0   :  { %1674 = vst.msk [vmem:[%s3661_s10 + $0x30] sm:$0xff] %vm1667_vm2, %v1648_v18 }
 0x2d1   :  { %v1589_v57 = vpop.xlane.xlu1 %1588 }
 0x2d2   :  { %v2209_v14 = vld [vmem:[%s3653_s1 + $0x18] sm:$0xff]  ;;  %v1649_v39 = vmul.f32 0.015625, %v1589_v57 }
 0x2d3   :  { %v1696_v22 = vmul.f32 %v2209_v14, %v1645_v38 }
 0x2d4   :  { %1675 = vst.msk [vmem:[%s3661_s10 + $0x38] sm:$0xff] %vm1667_vm2, %v1649_v39 }
 0x2d5   :  { %1721 = vst.msk [vmem:[%s3662_s9 + $0x18] sm:$0xff] %vm84_vm0, %v1696_v22  ;;  %v1592_v6 = vpop.xlane.xlu0 %1591 }
 0x2d6   :  { %v1650_v13 = vmul.f32 0.015625, %v1592_v6 }
 0x2d7   :  { %v1595_v19 = vpop.xlane.xlu1 %1594 }
 0x2d8   :  { %1676 = vst.msk [vmem:[%s3661_s10 + $0x40] sm:$0xff] %vm1667_vm2, %v1650_v13  ;;  %v1651_v45 = vmul.f32 0.015625, %v1595_v19 }
 0x2da   :  { %1677 = vst.msk [vmem:[%s3661_s10 + $0x48] sm:$0xff] %vm1667_vm2, %v1651_v45 }
 0x2dc   :  { %v2210_v8 = vld [vmem:[%s3653_s1 + $0x20] sm:$0xff]  ;;  %v1598_v25 = vpop.xlane.xlu0 %1597 }
 0x2dd   :  { %v1697_v55 = vmul.f32 %v2210_v8, %v1646_v58  ;;  %v1652_v17 = vmul.f32 0.015625, %v1598_v25 }
 0x2df   :  { %1722 = vst.msk [vmem:[%s3662_s9 + $0x20] sm:$0xff] %vm84_vm0, %v1697_v55 }
 0x2e0   :  { %1678 = vst.msk [vmem:[%s3661_s10 + $0x50] sm:$0xff] %vm1667_vm2, %v1652_v17  ;;  %v1601_v34 = vpop.xlane.xlu1 %1600 }
 0x2e1   :  { %v1653_v40 = vmul.f32 0.015625, %v1601_v34 }
 0x2e3   :  { %1679 = vst.msk [vmem:[%s3661_s10 + $0x58] sm:$0xff] %vm1667_vm2, %v1653_v40 }
 0x2e4   :  { %v1604_v16 = vpop.xlane.xlu0 %1603 }
 0x2e5   :  { %v1654_v51 = vmul.f32 0.015625, %v1604_v16 }
 0x2e6   :  { %v2211_v56 = vld [vmem:[%s3653_s1 + $0x28] sm:$0xff] }
 0x2e7   :  { %v1698_v7 = vmul.f32 %v2211_v56, %v1647_v41  ;;  %1680 = vst.msk [vmem:[%s3661_s10 + $0x60] sm:$0xff] %vm1667_vm2, %v1654_v51 }
 0x2e9   :  { %1723 = vst.msk [vmem:[%s3662_s9 + $0x28] sm:$0xff] %vm84_vm0, %v1698_v7  ;;  %v1607_v52 = vpop.xlane.xlu1 %1606 }
 0x2ea   :  { %v1655_v44 = vmul.f32 0.015625, %v1607_v52 }
 0x2ec   :  { %1681 = vst.msk [vmem:[%s3661_s10 + $0x68] sm:$0xff] %vm1667_vm2, %v1655_v44 }
 0x2ed   :  { %v1610_v47 = vpop.xlane.xlu0 %1609 }
 0x2ee   :  { %v1656_v37 = vmul.f32 0.015625, %v1610_v47 }
 0x2f0   :  { %v2212_v1 = vld [vmem:[%s3653_s1 + $0x30] sm:$0xff]  ;;  %1682 = vst.msk [vmem:[%s3661_s10 + $0x70] sm:$0xff] %vm1667_vm2, %v1656_v37 }
 0x2f1   :  { %v1699_v15 = vmul.f32 %v2212_v1, %v1648_v18  ;;  %v1613_v29 = vpop.xlane.xlu1 %1612 }
 0x2f2   :  { %v1657_v23 = vmul.f32 0.015625, %v1613_v29 }
 0x2f3   :  { %1724 = vst.msk [vmem:[%s3662_s9 + $0x30] sm:$0xff] %vm84_vm0, %v1699_v15 }
 0x2f4   :  { %1683 = vst.msk [vmem:[%s3661_s10 + $0x78] sm:$0xff] %vm1667_vm2, %v1657_v23 }
 0x2f5   :  { %v1616_v5 = vpop.xlane.xlu0 %1615 }
 0x2f6   :  { %v1658_v10 = vmul.f32 0.015625, %v1616_v5 }
 0x2f8   :  { %1684 = vst.msk [vmem:[%s3661_s10 + $0x80] sm:$0xff] %vm1667_vm2, %v1658_v10  ;;  %v1619_v32 = vpop.xlane.xlu1 %1618 }
 0x2f9   :  { %v1659_v61 = vmul.f32 0.015625, %v1619_v32 }
 0x2fa   :  { %v2213_v26 = vld [vmem:[%s3653_s1 + $0x38] sm:$0xff] }
 0x2fb   :  { %v1700_v33 = vmul.f32 %v2213_v26, %v1649_v39  ;;  %1685 = vst.msk [vmem:[%s3661_s10 + $0x88] sm:$0xff] %vm1667_vm2, %v1659_v61 }
 0x2fc   :  { %v1622_v0 = vpop.xlane.xlu0 %1621 }
 0x2fd   :  { %1725 = vst.msk [vmem:[%s3662_s9 + $0x38] sm:$0xff] %vm84_vm0, %v1700_v33  ;;  %v1660_v53 = vmul.f32 0.015625, %v1622_v0 }
 0x2ff   :  { %1686 = vst.msk [vmem:[%s3661_s10 + $0x90] sm:$0xff] %vm1667_vm2, %v1660_v53 }
 0x300   :  { %v1625_v42 = vpop.xlane.xlu1 %1624 }
 0x301   :  { %v1661_v38 = vmul.f32 0.015625, %v1625_v42 }
 0x303   :  { %1687 = vst.msk [vmem:[%s3661_s10 + $0x98] sm:$0xff] %vm1667_vm2, %v1661_v38 }
 0x304   :  { %v2214_v60 = vld [vmem:[%s3653_s1 + $0x40] sm:$0xff]  ;;  %v1628_v59 = vpop.xlane.xlu0 %1627 }
 0x305   :  { %v1701_v49 = vmul.f32 %v2214_v60, %v1650_v13  ;;  %v1662_v58 = vmul.f32 0.015625, %v1628_v59 }
 0x307   :  { %1726 = vst.msk [vmem:[%s3662_s9 + $0x40] sm:$0xff] %vm84_vm0, %v1701_v49 }
 0x308   :  { %1688 = vst.msk [vmem:[%s3661_s10 + $0xa0] sm:$0xff] %vm1667_vm2, %v1662_v58 }
 0x309   :  { %v1631_v4 = vpop.xlane.xlu1 %1630 }
 0x30a   :  { %v1663_v41 = vmul.f32 0.015625, %v1631_v4 }
 0x30c   :  { %1689 = vst.msk [vmem:[%s3661_s10 + $0xa8] sm:$0xff] %vm1667_vm2, %v1663_v41 }
 0x30d   :  { %v1634_v62 = vpop.xlane.xlu0 %1633 }
 0x30e   :  { %v2215_v9 = vld [vmem:[%s3653_s1 + $0x48] sm:$0xff]  ;;  %v1664_v18 = vmul.f32 0.015625, %v1634_v62 }
 0x30f   :  { %v1702_v35 = vmul.f32 %v2215_v9, %v1651_v45 }
 0x310   :  { %1690 = vst.msk [vmem:[%s3661_s10 + $0xb0] sm:$0xff] %vm1667_vm2, %v1664_v18 }
 0x311   :  { %1727 = vst.msk [vmem:[%s3662_s9 + $0x48] sm:$0xff] %vm84_vm0, %v1702_v35  ;;  %v1637_v57 = vpop.xlane.xlu1 %1636 }
 0x312   :  { %v1665_v39 = vmul.f32 0.015625, %v1637_v57 }
 0x314   :  { %1691 = vst.msk [vmem:[%s3661_s10 + $0xb8] sm:$0xff] %vm1667_vm2, %v1665_v39 }
 0x315   :  { %v1640_v6 = vpop.xlane.xlu0 %1639 }
 0x316   :  { %v1666_v13 = vmul.f32 0.015625, %v1640_v6 }
 0x318   :  { %v2216_v24 = vld [vmem:[%s3653_s1 + $0x50] sm:$0xff]  ;;  %1692 = vst.msk [vmem:[%s3661_s10 + $0xc0] sm:$0xff] %vm1667_vm2, %v1666_v13 }
 0x319   :  { %v1703_v50 = vmul.f32 %v2216_v24, %v1652_v17 }
 0x31b   :  { %1728 = vst.msk [vmem:[%s3662_s9 + $0x50] sm:$0xff] %vm84_vm0, %v1703_v50 }
 0x322   :  { %v2217_v31 = vld [vmem:[%s3653_s1 + $0x58] sm:$0xff] }
 0x323   :  { %v1704_v46 = vmul.f32 %v2217_v31, %v1653_v40 }
 0x325   :  { %1729 = vst.msk [vmem:[%s3662_s9 + $0x58] sm:$0xff] %vm84_vm0, %v1704_v46 }
 0x32c   :  { %v2218_v30 = vld [vmem:[%s3653_s1 + $0x60] sm:$0xff] }
 0x32d   :  { %v1705_v21 = vmul.f32 %v2218_v30, %v1654_v51 }
 0x32f   :  { %1730 = vst.msk [vmem:[%s3662_s9 + $0x60] sm:$0xff] %vm84_vm0, %v1705_v21 }
 0x336   :  { %v2219_v28 = vld [vmem:[%s3653_s1 + $0x68] sm:$0xff] }
 0x337   :  { %v1706_v54 = vmul.f32 %v2219_v28, %v1655_v44 }
 0x339   :  { %1731 = vst.msk [vmem:[%s3662_s9 + $0x68] sm:$0xff] %vm84_vm0, %v1706_v54 }
 0x340   :  { %v2220_v3 = vld [vmem:[%s3653_s1 + $0x70] sm:$0xff] }
 0x341   :  { %v1707_v2 = vmul.f32 %v2220_v3, %v1656_v37 }
 0x343   :  { %1732 = vst.msk [vmem:[%s3662_s9 + $0x70] sm:$0xff] %vm84_vm0, %v1707_v2 }
 0x34a   :  { %v2221_v63 = vld [vmem:[%s3653_s1 + $0x78] sm:$0xff] }
 0x34b   :  { %v1708_v20 = vmul.f32 %v2221_v63, %v1657_v23 }
 0x34d   :  { %1733 = vst.msk [vmem:[%s3662_s9 + $0x78] sm:$0xff] %vm84_vm0, %v1708_v20 }
 0x354   :  { %v2222_v48 = vld [vmem:[%s3653_s1 + $0x80] sm:$0xff] }
 0x355   :  { %v1709_v12 = vmul.f32 %v2222_v48, %v1658_v10 }
 0x357   :  { %1734 = vst.msk [vmem:[%s3662_s9 + $0x80] sm:$0xff] %vm84_vm0, %v1709_v12 }
 0x35e   :  { %v2223_v11 = vld [vmem:[%s3653_s1 + $0x88] sm:$0xff] }
 0x35f   :  { %v1710_v27 = vmul.f32 %v2223_v11, %v1659_v61 }
 0x361   :  { %1735 = vst.msk [vmem:[%s3662_s9 + $0x88] sm:$0xff] %vm84_vm0, %v1710_v27 }
 0x368   :  { %v2224_v36 = vld [vmem:[%s3653_s1 + $0x90] sm:$0xff] }
 0x369   :  { %v1711_v43 = vmul.f32 %v2224_v36, %v1660_v53 }
 0x36b   :  { %1736 = vst.msk [vmem:[%s3662_s9 + $0x90] sm:$0xff] %vm84_vm0, %v1711_v43 }
 0x372   :  { %v2225_v14 = vld [vmem:[%s3653_s1 + $0x98] sm:$0xff] }
 0x373   :  { %v1712_v22 = vmul.f32 %v2225_v14, %v1661_v38 }
 0x375   :  { %1737 = vst.msk [vmem:[%s3662_s9 + $0x98] sm:$0xff] %vm84_vm0, %v1712_v22 }
 0x37c   :  { %v2226_v8 = vld [vmem:[%s3653_s1 + $0xa0] sm:$0xff] }
 0x37d   :  { %v1713_v55 = vmul.f32 %v2226_v8, %v1662_v58 }
 0x37f   :  { %1738 = vst.msk [vmem:[%s3662_s9 + $0xa0] sm:$0xff] %vm84_vm0, %v1713_v55 }
 0x386   :  { %v2227_v56 = vld [vmem:[%s3653_s1 + $0xa8] sm:$0xff] }
 0x387   :  { %v1714_v7 = vmul.f32 %v2227_v56, %v1663_v41 }
 0x389   :  { %1739 = vst.msk [vmem:[%s3662_s9 + $0xa8] sm:$0xff] %vm84_vm0, %v1714_v7 }
 0x390   :  { %v2228_v1 = vld [vmem:[%s3653_s1 + $0xb0] sm:$0xff] }
 0x391   :  { %v1715_v15 = vmul.f32 %v2228_v1, %v1664_v18 }
 0x393   :  { %1740 = vst.msk [vmem:[%s3662_s9 + $0xb0] sm:$0xff] %vm84_vm0, %v1715_v15 }
 0x39a   :  { %v2229_v26 = vld [vmem:[%s3653_s1 + $0xb8] sm:$0xff] }
 0x39b   :  { %v1716_v33 = vmul.f32 %v2229_v26, %v1665_v39 }
 0x39d   :  { %1741 = vst.msk [vmem:[%s3662_s9 + $0xb8] sm:$0xff] %vm84_vm0, %v1716_v33 }
 0x3a4   :  { %v2230_v60 = vld [vmem:[%s3653_s1 + $0xc0] sm:$0xff] }
 0x3a5   :  { %v1717_v49 = vmul.f32 %v2230_v60, %v1666_v13 }
 0x3a7   :  { %1742 = vst.msk [vmem:[%s3662_s9 + $0xc0] sm:$0xff] %vm84_vm0, %v1717_v49 }

</bundles_post_ra>
